<compile_context>
chip_gen: v5e
topology: v5e:2x2
jax: 0.10.0
libtpu: 0.0.40
codegen_flags: <defaults>
</compile_context>

<pallas_src>
import jax
import jax.numpy as jnp
from jax.experimental import pallas as pl
from jax.experimental.pallas import tpu as pltpu


# 3x3 taps in (dy-1, dx-1) order; must match the weight-matrix K ordering below.
_TAPS = tuple((dy - 1, dx - 1) for dy in range(3) for dx in range(3))


def _make_kernel(n_in, width, s_len, n_blk):
    """Fused conv+BN(eval)+ReLU6+maxpool kernel for fixed (Cin, W, H*W, images/step)."""
    lanes = n_blk * s_len

    def kernel(x_ref, w_ref, b_ref, m_ref, g_ref, o_ref, patch_ref):
        # x_ref:     (n_blk, Cin, S)  NCHW input block, spatial flattened into lanes
        # w_ref:     (Cout, 9*Cin)    conv weights with BN scale folded (K order: (dy,dx,c))
        # b_ref:     (Cout, 1)        folded bias = (conv_b - mean) * scale + beta
        # m_ref:     (9, S)           0/1 border masks (zero-padding equivalent), bf16
        # g_ref:     (L, Lq)          0/1 pool top-left selection matrix, bf16, L=n_blk*S
        # o_ref:     (Cout, Lq)       pooled output, lanes = n_blk * Hh*Wh
        # patch_ref: (9*Cin, L)       VMEM scratch for the shifted input planes

        # Build the 27 shifted+masked input planes per image with lane rotations (XLU)
        # and 0/1 masks, storing each plane directly into the patch scratch.
        for b in range(n_blk):
            xb = x_ref[b]                                            # (Cin, S) f32
            for t, (oy, ox) in enumerate(_TAPS):
                d = oy * width + ox                                  # flattened src offset
                plane = xb if d == 0 else pltpu.roll(xb, shift=(-d) % s_len, axis=1)
                if not (oy == 0 and ox == 0):
                    plane = plane * m_ref[t:t + 1, :]                # zero the padded taps
                patch_ref[t * n_in:(t + 1) * n_in, b * s_len:(b + 1) * s_len] = plane

        # 3x3 conv (+ folded BN scale) as a single K=27 MXU matmul -> (Cout, L).
        conv = jnp.dot(w_ref[...], patch_ref[...], preferred_element_type=jnp.float32)

        # 2x2 stride-2 max pool: two lane rolls + maxima give the 2x2-window max at every
        # top-left position; one 0/1 selection matmul keeps only complete windows.
        # (Wrap-around lanes land only on positions the selection matrix never picks.)
        m1 = jnp.maximum(conv, pltpu.roll(conv, shift=lanes - 1, axis=1))
        m2 = jnp.maximum(m1, pltpu.roll(m1, shift=lanes - width, axis=1))
        pooled = jnp.dot(m2, g_ref[...].astype(jnp.float32),
                         preferred_element_type=jnp.float32)         # (Cout, Lq)

        # Per-channel bias + ReLU6 (both commute with the max pool). Lane-dense store.
        o_ref[...] = jnp.clip(pooled + b_ref[...], 0.0, 6.0)

    return kernel


def first_transformation(x_nchw, w_hwio, conv_b, gamma, beta, run_mean, run_var,
                         eps=1e-5):
    """(N, 3, H, W) f32 -> (N, 32, H//2, W//2) f32, eval-mode BatchNorm."""
    N, Cin, H, W = x_nchw.shape
    Cout = w_hwio.shape[-1]
    assert H % 2 == 0 and W % 2 == 0, "MaxPool2d(2,2) expects even H, W"
    Hh, Wh = H // 2, W // 2
    S, Sq = H * W, Hh * Wh

    # Pick how many images share one grid step: smallest divisor of N whose pooled
    # lane count is a multiple of 128 (lane-dense unmasked stores); otherwise fuse the
    # whole batch (block == full array is always legal).  With larger N this keeps
    # nb >= 2 grid steps, which also feeds both TensorCores on v7x.
    n_blk = N
    for cand in range(1, N + 1):
        if N % cand == 0 and (cand * Sq) % 128 == 0:
            n_blk = cand
            break
    nb = N // n_blk
    L, Lq = n_blk * S, n_blk * Sq

    # Free (contiguity-preserving) reshape of the NCHW input: no wrapper transpose/pad.
    x_flat = x_nchw.reshape(N, Cin, S).astype(jnp.float32)

    # Fold BN (eval) scale into the conv weights; keep a single per-channel bias.
    inv_std = jax.lax.rsqrt(run_var.astype(jnp.float32) + eps)
    scale = gamma.astype(jnp.float32) * inv_std
    w_mat = (jnp.transpose(w_hwio, (3, 0, 1, 2)).reshape(Cout, 9 * Cin)
             .astype(jnp.float32) * scale[:, None])                  # (Cout, 27)
    bias = ((conv_b.astype(jnp.float32) - run_mean.astype(jnp.float32)) * scale
            + beta.astype(jnp.float32)).reshape(Cout, 1)             # (Cout, 1)

    # Constant per-image border masks: 1 where the shifted source pixel is in-bounds.
    # bf16 is exact for 0/1 and halves their VMEM/DMA footprint.
    s_idx = jnp.arange(S, dtype=jnp.int32)
    h_idx, w_idx = s_idx // W, s_idx % W
    masks = []
    for oy, ox in _TAPS:
        ok = ((h_idx + oy >= 0) & (h_idx + oy < H) &
              (w_idx + ox >= 0) & (w_idx + ox < W))
        masks.append(ok)
    m_mat = jnp.stack(masks, axis=0).astype(jnp.bfloat16)            # (9, S)

    # Single 0/1 selection matrix for the 2x2/2 pool: picks the top-left source lane of
    # every complete 2x2 window (per image within the merged lane axis).  bf16, exact.
    j_idx = jnp.arange(Lq, dtype=jnp.int32)
    jb, jr = j_idx // Sq, j_idx % Sq
    jh, jw = jr // Wh, jr % Wh
    src = jb * S + (2 * jh) * W + 2 * jw                             # (Lq,)
    i_idx = jnp.arange(L, dtype=jnp.int32)
    g_mat = (i_idx[:, None] == src[None, :]).astype(jnp.bfloat16)    # (L, Lq)

    kernel = _make_kernel(Cin, W, S, n_blk)
    out_flat = pl.pallas_call(
        kernel,
        out_shape=jax.ShapeDtypeStruct((Cout, nb * Lq), jnp.float32),
        grid=(nb,),
        in_specs=[
            pl.BlockSpec((n_blk, Cin, S), lambda i: (i, 0, 0)),
            pl.BlockSpec((Cout, 9 * Cin), lambda i: (0, 0)),
            pl.BlockSpec((Cout, 1), lambda i: (0, 0)),
            pl.BlockSpec((9, S), lambda i: (0, 0)),
            pl.BlockSpec((L, Lq), lambda i: (0, 0)),
        ],
        out_specs=pl.BlockSpec((Cout, Lq), lambda i: (0, i)),
        scratch_shapes=[pltpu.VMEM((9 * Cin, L), jnp.float32)],
        compiler_params=pltpu.CompilerParams(
            dimension_semantics=("parallel",),
            vmem_limit_bytes=32 * 1024 * 1024),
    )(x_flat, w_mat, bias, m_mat, g_mat)

    # Lane-merged (Cout, N, Hh, Wh) layout back to NCHW.  A fused downstream consumer
    # could take the channel-major layout directly and skip this transpose.
    return out_flat.reshape(Cout, N, Hh, Wh).transpose(1, 0, 2, 3)


def _reference(x_nchw, w_hwio, conv_b, gamma, beta, run_mean, run_var, eps=1e-5):
    w_oihw = jnp.transpose(w_hwio, (3, 2, 0, 1))
    y = jax.lax.conv_general_dilated(
        x_nchw, w_oihw, window_strides=(1, 1), padding=((1, 1), (1, 1)),
        dimension_numbers=("NCHW", "OIHW", "NCHW"),
        precision=jax.lax.Precision.HIGHEST)
    y = y + conv_b.reshape(1, -1, 1, 1)
    y = (y - run_mean.reshape(1, -1, 1, 1)) / jnp.sqrt(run_var.reshape(1, -1, 1, 1) + eps)
    y = y * gamma.reshape(1, -1, 1, 1) + beta.reshape(1, -1, 1, 1)
    y = jnp.clip(y, 0.0, 6.0)
    y = jax.lax.reduce_window(y, -jnp.inf, jax.lax.max,
                              (1, 1, 2, 2), (1, 1, 2, 2), "VALID")
    return y


if __name__ == "__main__":
    key = jax.random.PRNGKey(0)
    k_x, k_w, k_b, k_g, k_be, k_m, k_v = jax.random.split(key, 7)

    N, Cin, H, W = 2, 3, 16, 16
    Cout = 32

    x = jax.random.normal(k_x, (N, Cin, H, W), dtype=jnp.float32)

    # Deterministic synthetic parameters (shapes follow nn.Conv2d / nn.BatchNorm2d).
    w_hwio = 0.1 * jax.random.normal(k_w, (3, 3, Cin, Cout), dtype=jnp.float32)
    conv_b = 0.1 * jax.random.normal(k_b, (Cout,), dtype=jnp.float32)
    gamma = 1.0 + 0.1 * jax.random.normal(k_g, (Cout,), dtype=jnp.float32)
    beta = 0.1 * jax.random.normal(k_be, (Cout,), dtype=jnp.float32)
    run_mean = 0.1 * jax.random.normal(k_m, (Cout,), dtype=jnp.float32)
    run_var = 1.0 + 0.1 * jax.random.uniform(k_v, (Cout,), dtype=jnp.float32)

    out = jax.block_until_ready(
        first_transformation(x, w_hwio, conv_b, gamma, beta, run_mean, run_var))
    ref = jax.block_until_ready(
        _reference(x, w_hwio, conv_b, gamma, beta, run_mean, run_var))

    assert out.shape == (N, Cout, H // 2, W // 2), out.shape
    assert jnp.allclose(out, ref, atol=2e-3, rtol=2e-3), \
        f"max abs err = {jnp.max(jnp.abs(out - ref))}"

    print("KERNEL_OK")
</pallas_src>

<mosaic_0001>
module attributes {stable_mosaic.version = 11 : i64} {
  func.func @kernel(%arg0: i32, %arg1: memref<2x3x256xf32, #tpu.memory_space<vmem>>, %arg2: memref<32x27xf32, #tpu.memory_space<vmem>>, %arg3: memref<32x1xf32, #tpu.memory_space<vmem>>, %arg4: memref<9x256xbf16, #tpu.memory_space<vmem>>, %arg5: memref<512x128xbf16, #tpu.memory_space<vmem>>, %arg6: memref<32x128xf32, #tpu.memory_space<vmem>>, %arg7: memref<27x512xf32, #tpu.memory_space<vmem>>) attributes {dimension_semantics = [#tpu.dimension_semantics<parallel>], iteration_bounds = array<i64: 1>, scalar_prefetch = 0 : i64, scratch_operands = 1 : i64, tpu.core_type = #tpu.core_type<tc>, window_params = [{transform_indices = @transform_0, window_bounds = array<i64: 2, 3, 256>}, {pipeline_mode = #tpu.pipeline_mode<synchronous>, transform_indices = @transform_1, window_bounds = array<i64: 32, 27>}, {pipeline_mode = #tpu.pipeline_mode<synchronous>, transform_indices = @transform_2, window_bounds = array<i64: 32, 1>}, {pipeline_mode = #tpu.pipeline_mode<synchronous>, transform_indices = @transform_3, window_bounds = array<i64: 9, 256>}, {pipeline_mode = #tpu.pipeline_mode<synchronous>, transform_indices = @transform_4, window_bounds = array<i64: 512, 128>}, {transform_indices = @transform_5, window_bounds = array<i64: 32, 128>}]} {
    %c0 = arith.constant 0 : index
    %c0_0 = arith.constant 0 : index
    %c0_1 = arith.constant 0 : index
    %0 = vector.load %arg1[%c0, %c0_0, %c0_1] : memref<2x3x256xf32, #tpu.memory_space<vmem>>, vector<1x3x256xf32>
    %1 = vector.shape_cast %0 : vector<1x3x256xf32> to vector<3x256xf32>
    %c17_i32 = arith.constant 17 : i32
    %2 = tpu.dynamic_rotate %1 by %c17_i32 dim 1 : vector<3x256xf32>, i32 -> vector<3x256xf32>
    %c0_2 = arith.constant 0 : index
    %c0_3 = arith.constant 0 : index
    %3 = vector.load %arg4[%c0_2, %c0_3] : memref<9x256xbf16, #tpu.memory_space<vmem>>, vector<1x256xbf16>
    %4 = arith.extf %3 : vector<1x256xbf16> to vector<1x256xf32>
    %5 = vector.broadcast %4 : vector<1x256xf32> to vector<3x256xf32>
    %6 = arith.mulf %2, %5 : vector<3x256xf32>
    %c0_4 = arith.constant 0 : index
    %c0_5 = arith.constant 0 : index
    %7 = vector.load %arg7[%c0_4, %c0_5] : memref<27x512xf32, #tpu.memory_space<vmem>>, vector<3x256xf32>
    tpu.vector_store %arg7[%c0_4, %c0_5], %6 {strides = array<i32>} : memref<27x512xf32, #tpu.memory_space<vmem>>, vector<3x256xf32>,
    %c16_i32 = arith.constant 16 : i32
    %8 = tpu.dynamic_rotate %1 by %c16_i32 dim 1 : vector<3x256xf32>, i32 -> vector<3x256xf32>
    %c1 = arith.constant 1 : index
    %c0_6 = arith.constant 0 : index
    %9 = vector.load %arg4[%c1, %c0_6] : memref<9x256xbf16, #tpu.memory_space<vmem>>, vector<1x256xbf16>
    %10 = arith.extf %9 : vector<1x256xbf16> to vector<1x256xf32>
    %11 = vector.broadcast %10 : vector<1x256xf32> to vector<3x256xf32>
    %12 = arith.mulf %8, %11 : vector<3x256xf32>
    %c3 = arith.constant 3 : index
    %c0_7 = arith.constant 0 : index
    %13 = vector.load %arg7[%c3, %c0_7] : memref<27x512xf32, #tpu.memory_space<vmem>>, vector<3x256xf32>
    tpu.vector_store %arg7[%c3, %c0_7], %12 {strides = array<i32>} : memref<27x512xf32, #tpu.memory_space<vmem>>, vector<3x256xf32>,
    %c15_i32 = arith.constant 15 : i32
    %14 = tpu.dynamic_rotate %1 by %c15_i32 dim 1 : vector<3x256xf32>, i32 -> vector<3x256xf32>
    %c2 = arith.constant 2 : index
    %c0_8 = arith.constant 0 : index
    %15 = vector.load %arg4[%c2, %c0_8] : memref<9x256xbf16, #tpu.memory_space<vmem>>, vector<1x256xbf16>
    %16 = arith.extf %15 : vector<1x256xbf16> to vector<1x256xf32>
    %17 = vector.broadcast %16 : vector<1x256xf32> to vector<3x256xf32>
    %18 = arith.mulf %14, %17 : vector<3x256xf32>
    %c6 = arith.constant 6 : index
    %c0_9 = arith.constant 0 : index
    %19 = vector.load %arg7[%c6, %c0_9] : memref<27x512xf32, #tpu.memory_space<vmem>>, vector<3x256xf32>
    tpu.vector_store %arg7[%c6, %c0_9], %18 {strides = array<i32>} : memref<27x512xf32, #tpu.memory_space<vmem>>, vector<3x256xf32>,
    %c1_i32 = arith.constant 1 : i32
    %20 = tpu.dynamic_rotate %1 by %c1_i32 dim 1 : vector<3x256xf32>, i32 -> vector<3x256xf32>
    %c3_10 = arith.constant 3 : index
    %c0_11 = arith.constant 0 : index
    %21 = vector.load %arg4[%c3_10, %c0_11] : memref<9x256xbf16, #tpu.memory_space<vmem>>, vector<1x256xbf16>
    %22 = arith.extf %21 : vector<1x256xbf16> to vector<1x256xf32>
    %23 = vector.broadcast %22 : vector<1x256xf32> to vector<3x256xf32>
    %24 = arith.mulf %20, %23 : vector<3x256xf32>
    %c9 = arith.constant 9 : index
    %c0_12 = arith.constant 0 : index
    %25 = vector.load %arg7[%c9, %c0_12] : memref<27x512xf32, #tpu.memory_space<vmem>>, vector<3x256xf32>
    tpu.vector_store %arg7[%c9, %c0_12], %24 {strides = array<i32>} : memref<27x512xf32, #tpu.memory_space<vmem>>, vector<3x256xf32>,
    %c12 = arith.constant 12 : index
    %c0_13 = arith.constant 0 : index
    %26 = vector.load %arg7[%c12, %c0_13] : memref<27x512xf32, #tpu.memory_space<vmem>>, vector<3x256xf32>
    tpu.vector_store %arg7[%c12, %c0_13], %1 {strides = array<i32>} : memref<27x512xf32, #tpu.memory_space<vmem>>, vector<3x256xf32>,
    %c255_i32 = arith.constant 255 : i32
    %27 = tpu.dynamic_rotate %1 by %c255_i32 dim 1 : vector<3x256xf32>, i32 -> vector<3x256xf32>
    %c5 = arith.constant 5 : index
    %c0_14 = arith.constant 0 : index
    %28 = vector.load %arg4[%c5, %c0_14] : memref<9x256xbf16, #tpu.memory_space<vmem>>, vector<1x256xbf16>
    %29 = arith.extf %28 : vector<1x256xbf16> to vector<1x256xf32>
    %30 = vector.broadcast %29 : vector<1x256xf32> to vector<3x256xf32>
    %31 = arith.mulf %27, %30 : vector<3x256xf32>
    %c15 = arith.constant 15 : index
    %c0_15 = arith.constant 0 : index
    %32 = vector.load %arg7[%c15, %c0_15] : memref<27x512xf32, #tpu.memory_space<vmem>>, vector<3x256xf32>
    tpu.vector_store %arg7[%c15, %c0_15], %31 {strides = array<i32>} : memref<27x512xf32, #tpu.memory_space<vmem>>, vector<3x256xf32>,
    %c241_i32 = arith.constant 241 : i32
    %33 = tpu.dynamic_rotate %1 by %c241_i32 dim 1 : vector<3x256xf32>, i32 -> vector<3x256xf32>
    %c6_16 = arith.constant 6 : index
    %c0_17 = arith.constant 0 : index
    %34 = vector.load %arg4[%c6_16, %c0_17] : memref<9x256xbf16, #tpu.memory_space<vmem>>, vector<1x256xbf16>
    %35 = arith.extf %34 : vector<1x256xbf16> to vector<1x256xf32>
    %36 = vector.broadcast %35 : vector<1x256xf32> to vector<3x256xf32>
    %37 = arith.mulf %33, %36 : vector<3x256xf32>
    %c18 = arith.constant 18 : index
    %c0_18 = arith.constant 0 : index
    %38 = vector.load %arg7[%c18, %c0_18] : memref<27x512xf32, #tpu.memory_space<vmem>>, vector<3x256xf32>
    tpu.vector_store %arg7[%c18, %c0_18], %37 {strides = array<i32>} : memref<27x512xf32, #tpu.memory_space<vmem>>, vector<3x256xf32>,
    %c240_i32 = arith.constant 240 : i32
    %39 = tpu.dynamic_rotate %1 by %c240_i32 dim 1 : vector<3x256xf32>, i32 -> vector<3x256xf32>
    %c7 = arith.constant 7 : index
    %c0_19 = arith.constant 0 : index
    %40 = vector.load %arg4[%c7, %c0_19] : memref<9x256xbf16, #tpu.memory_space<vmem>>, vector<1x256xbf16>
    %41 = arith.extf %40 : vector<1x256xbf16> to vector<1x256xf32>
    %42 = vector.broadcast %41 : vector<1x256xf32> to vector<3x256xf32>
    %43 = arith.mulf %39, %42 : vector<3x256xf32>
    %c21 = arith.constant 21 : index
    %c0_20 = arith.constant 0 : index
    %44 = vector.load %arg7[%c21, %c0_20] : memref<27x512xf32, #tpu.memory_space<vmem>>, vector<3x256xf32>
    tpu.vector_store %arg7[%c21, %c0_20], %43 {strides = array<i32>} : memref<27x512xf32, #tpu.memory_space<vmem>>, vector<3x256xf32>,
    %c239_i32 = arith.constant 239 : i32
    %45 = tpu.dynamic_rotate %1 by %c239_i32 dim 1 : vector<3x256xf32>, i32 -> vector<3x256xf32>
    %c8 = arith.constant 8 : index
    %c0_21 = arith.constant 0 : index
    %46 = vector.load %arg4[%c8, %c0_21] : memref<9x256xbf16, #tpu.memory_space<vmem>>, vector<1x256xbf16>
    %47 = arith.extf %46 : vector<1x256xbf16> to vector<1x256xf32>
    %48 = vector.broadcast %47 : vector<1x256xf32> to vector<3x256xf32>
    %49 = arith.mulf %45, %48 : vector<3x256xf32>
    %c24 = arith.constant 24 : index
    %c0_22 = arith.constant 0 : index
    %50 = vector.load %arg7[%c24, %c0_22] : memref<27x512xf32, #tpu.memory_space<vmem>>, vector<3x256xf32>
    tpu.vector_store %arg7[%c24, %c0_22], %49 {strides = array<i32>} : memref<27x512xf32, #tpu.memory_space<vmem>>, vector<3x256xf32>,
    %c1_23 = arith.constant 1 : index
    %c0_24 = arith.constant 0 : index
    %c0_25 = arith.constant 0 : index
    %51 = vector.load %arg1[%c1_23, %c0_24, %c0_25] : memref<2x3x256xf32, #tpu.memory_space<vmem>>, vector<1x3x256xf32>
    %52 = vector.shape_cast %51 : vector<1x3x256xf32> to vector<3x256xf32>
    %c17_i32_26 = arith.constant 17 : i32
    %53 = tpu.dynamic_rotate %52 by %c17_i32_26 dim 1 : vector<3x256xf32>, i32 -> vector<3x256xf32>
    %c0_27 = arith.constant 0 : index
    %c0_28 = arith.constant 0 : index
    %54 = vector.load %arg4[%c0_27, %c0_28] : memref<9x256xbf16, #tpu.memory_space<vmem>>, vector<1x256xbf16>
    %55 = arith.extf %54 : vector<1x256xbf16> to vector<1x256xf32>
    %56 = vector.broadcast %55 : vector<1x256xf32> to vector<3x256xf32>
    %57 = arith.mulf %53, %56 : vector<3x256xf32>
    %c0_29 = arith.constant 0 : index
    %c256 = arith.constant 256 : index
    %58 = vector.load %arg7[%c0_29, %c256] : memref<27x512xf32, #tpu.memory_space<vmem>>, vector<3x256xf32>
    tpu.vector_store %arg7[%c0_29, %c256], %57 {strides = array<i32>} : memref<27x512xf32, #tpu.memory_space<vmem>>, vector<3x256xf32>,
    %c16_i32_30 = arith.constant 16 : i32
    %59 = tpu.dynamic_rotate %52 by %c16_i32_30 dim 1 : vector<3x256xf32>, i32 -> vector<3x256xf32>
    %c1_31 = arith.constant 1 : index
    %c0_32 = arith.constant 0 : index
    %60 = vector.load %arg4[%c1_31, %c0_32] : memref<9x256xbf16, #tpu.memory_space<vmem>>, vector<1x256xbf16>
    %61 = arith.extf %60 : vector<1x256xbf16> to vector<1x256xf32>
    %62 = vector.broadcast %61 : vector<1x256xf32> to vector<3x256xf32>
    %63 = arith.mulf %59, %62 : vector<3x256xf32>
    %c3_33 = arith.constant 3 : index
    %c256_34 = arith.constant 256 : index
    %64 = vector.load %arg7[%c3_33, %c256_34] : memref<27x512xf32, #tpu.memory_space<vmem>>, vector<3x256xf32>
    tpu.vector_store %arg7[%c3_33, %c256_34], %63 {strides = array<i32>} : memref<27x512xf32, #tpu.memory_space<vmem>>, vector<3x256xf32>,
    %c15_i32_35 = arith.constant 15 : i32
    %65 = tpu.dynamic_rotate %52 by %c15_i32_35 dim 1 : vector<3x256xf32>, i32 -> vector<3x256xf32>
    %c2_36 = arith.constant 2 : index
    %c0_37 = arith.constant 0 : index
    %66 = vector.load %arg4[%c2_36, %c0_37] : memref<9x256xbf16, #tpu.memory_space<vmem>>, vector<1x256xbf16>
    %67 = arith.extf %66 : vector<1x256xbf16> to vector<1x256xf32>
    %68 = vector.broadcast %67 : vector<1x256xf32> to vector<3x256xf32>
    %69 = arith.mulf %65, %68 : vector<3x256xf32>
    %c6_38 = arith.constant 6 : index
    %c256_39 = arith.constant 256 : index
    %70 = vector.load %arg7[%c6_38, %c256_39] : memref<27x512xf32, #tpu.memory_space<vmem>>, vector<3x256xf32>
    tpu.vector_store %arg7[%c6_38, %c256_39], %69 {strides = array<i32>} : memref<27x512xf32, #tpu.memory_space<vmem>>, vector<3x256xf32>,
    %c1_i32_40 = arith.constant 1 : i32
    %71 = tpu.dynamic_rotate %52 by %c1_i32_40 dim 1 : vector<3x256xf32>, i32 -> vector<3x256xf32>
    %c3_41 = arith.constant 3 : index
    %c0_42 = arith.constant 0 : index
    %72 = vector.load %arg4[%c3_41, %c0_42] : memref<9x256xbf16, #tpu.memory_space<vmem>>, vector<1x256xbf16>
    %73 = arith.extf %72 : vector<1x256xbf16> to vector<1x256xf32>
    %74 = vector.broadcast %73 : vector<1x256xf32> to vector<3x256xf32>
    %75 = arith.mulf %71, %74 : vector<3x256xf32>
    %c9_43 = arith.constant 9 : index
    %c256_44 = arith.constant 256 : index
    %76 = vector.load %arg7[%c9_43, %c256_44] : memref<27x512xf32, #tpu.memory_space<vmem>>, vector<3x256xf32>
    tpu.vector_store %arg7[%c9_43, %c256_44], %75 {strides = array<i32>} : memref<27x512xf32, #tpu.memory_space<vmem>>, vector<3x256xf32>,
    %c12_45 = arith.constant 12 : index
    %c256_46 = arith.constant 256 : index
    %77 = vector.load %arg7[%c12_45, %c256_46] : memref<27x512xf32, #tpu.memory_space<vmem>>, vector<3x256xf32>
    tpu.vector_store %arg7[%c12_45, %c256_46], %52 {strides = array<i32>} : memref<27x512xf32, #tpu.memory_space<vmem>>, vector<3x256xf32>,
    %c255_i32_47 = arith.constant 255 : i32
    %78 = tpu.dynamic_rotate %52 by %c255_i32_47 dim 1 : vector<3x256xf32>, i32 -> vector<3x256xf32>
    %c5_48 = arith.constant 5 : index
    %c0_49 = arith.constant 0 : index
    %79 = vector.load %arg4[%c5_48, %c0_49] : memref<9x256xbf16, #tpu.memory_space<vmem>>, vector<1x256xbf16>
    %80 = arith.extf %79 : vector<1x256xbf16> to vector<1x256xf32>
    %81 = vector.broadcast %80 : vector<1x256xf32> to vector<3x256xf32>
    %82 = arith.mulf %78, %81 : vector<3x256xf32>
    %c15_50 = arith.constant 15 : index
    %c256_51 = arith.constant 256 : index
    %83 = vector.load %arg7[%c15_50, %c256_51] : memref<27x512xf32, #tpu.memory_space<vmem>>, vector<3x256xf32>
    tpu.vector_store %arg7[%c15_50, %c256_51], %82 {strides = array<i32>} : memref<27x512xf32, #tpu.memory_space<vmem>>, vector<3x256xf32>,
    %c241_i32_52 = arith.constant 241 : i32
    %84 = tpu.dynamic_rotate %52 by %c241_i32_52 dim 1 : vector<3x256xf32>, i32 -> vector<3x256xf32>
    %c6_53 = arith.constant 6 : index
    %c0_54 = arith.constant 0 : index
    %85 = vector.load %arg4[%c6_53, %c0_54] : memref<9x256xbf16, #tpu.memory_space<vmem>>, vector<1x256xbf16>
    %86 = arith.extf %85 : vector<1x256xbf16> to vector<1x256xf32>
    %87 = vector.broadcast %86 : vector<1x256xf32> to vector<3x256xf32>
    %88 = arith.mulf %84, %87 : vector<3x256xf32>
    %c18_55 = arith.constant 18 : index
    %c256_56 = arith.constant 256 : index
    %89 = vector.load %arg7[%c18_55, %c256_56] : memref<27x512xf32, #tpu.memory_space<vmem>>, vector<3x256xf32>
    tpu.vector_store %arg7[%c18_55, %c256_56], %88 {strides = array<i32>} : memref<27x512xf32, #tpu.memory_space<vmem>>, vector<3x256xf32>,
    %c240_i32_57 = arith.constant 240 : i32
    %90 = tpu.dynamic_rotate %52 by %c240_i32_57 dim 1 : vector<3x256xf32>, i32 -> vector<3x256xf32>
    %c7_58 = arith.constant 7 : index
    %c0_59 = arith.constant 0 : index
    %91 = vector.load %arg4[%c7_58, %c0_59] : memref<9x256xbf16, #tpu.memory_space<vmem>>, vector<1x256xbf16>
    %92 = arith.extf %91 : vector<1x256xbf16> to vector<1x256xf32>
    %93 = vector.broadcast %92 : vector<1x256xf32> to vector<3x256xf32>
    %94 = arith.mulf %90, %93 : vector<3x256xf32>
    %c21_60 = arith.constant 21 : index
    %c256_61 = arith.constant 256 : index
    %95 = vector.load %arg7[%c21_60, %c256_61] : memref<27x512xf32, #tpu.memory_space<vmem>>, vector<3x256xf32>
    tpu.vector_store %arg7[%c21_60, %c256_61], %94 {strides = array<i32>} : memref<27x512xf32, #tpu.memory_space<vmem>>, vector<3x256xf32>,
    %c239_i32_62 = arith.constant 239 : i32
    %96 = tpu.dynamic_rotate %52 by %c239_i32_62 dim 1 : vector<3x256xf32>, i32 -> vector<3x256xf32>
    %c8_63 = arith.constant 8 : index
    %c0_64 = arith.constant 0 : index
    %97 = vector.load %arg4[%c8_63, %c0_64] : memref<9x256xbf16, #tpu.memory_space<vmem>>, vector<1x256xbf16>
    %98 = arith.extf %97 : vector<1x256xbf16> to vector<1x256xf32>
    %99 = vector.broadcast %98 : vector<1x256xf32> to vector<3x256xf32>
    %100 = arith.mulf %96, %99 : vector<3x256xf32>
    %c24_65 = arith.constant 24 : index
    %c256_66 = arith.constant 256 : index
    %101 = vector.load %arg7[%c24_65, %c256_66] : memref<27x512xf32, #tpu.memory_space<vmem>>, vector<3x256xf32>
    tpu.vector_store %arg7[%c24_65, %c256_66], %100 {strides = array<i32>} : memref<27x512xf32, #tpu.memory_space<vmem>>, vector<3x256xf32>,
    %c0_67 = arith.constant 0 : index
    %c0_68 = arith.constant 0 : index
    %102 = vector.load %arg2[%c0_67, %c0_68] : memref<32x27xf32, #tpu.memory_space<vmem>>, vector<32x27xf32>
    %c0_69 = arith.constant 0 : index
    %c0_70 = arith.constant 0 : index
    %103 = vector.load %arg7[%c0_69, %c0_70] : memref<27x512xf32, #tpu.memory_space<vmem>>, vector<27x512xf32>
    %cst = arith.constant dense<0.000000e+00> : vector<32x512xf32>
    %104 = tpu.matmul %102, %103, %cst {dimension_numbers = #tpu.dot_dimension_numbers<[1], [0], [0], [1], [0, 0, 1, 1], [], []>} : vector<32x27xf32>, vector<27x512xf32>, vector<32x512xf32> -> vector<32x512xf32>
    %c511_i32 = arith.constant 511 : i32
    %105 = tpu.dynamic_rotate %104 by %c511_i32 dim 1 : vector<32x512xf32>, i32 -> vector<32x512xf32>
    %106 = arith.maximumf %104, %105 : vector<32x512xf32>
    %c496_i32 = arith.constant 496 : i32
    %107 = tpu.dynamic_rotate %106 by %c496_i32 dim 1 : vector<32x512xf32>, i32 -> vector<32x512xf32>
    %108 = arith.maximumf %106, %107 : vector<32x512xf32>
    %c0_71 = arith.constant 0 : index
    %c0_72 = arith.constant 0 : index
    %109 = vector.load %arg5[%c0_71, %c0_72] : memref<512x128xbf16, #tpu.memory_space<vmem>>, vector<512x128xbf16>
    %110 = arith.extf %109 : vector<512x128xbf16> to vector<512x128xf32>
    %cst_73 = arith.constant dense<0.000000e+00> : vector<32x128xf32>
    %111 = tpu.matmul %108, %110, %cst_73 {dimension_numbers = #tpu.dot_dimension_numbers<[1], [0], [0], [1], [0, 0, 1, 1], [], []>} : vector<32x512xf32>, vector<512x128xf32>, vector<32x128xf32> -> vector<32x128xf32>
    %c0_74 = arith.constant 0 : index
    %c0_75 = arith.constant 0 : index
    %112 = vector.load %arg3[%c0_74, %c0_75] : memref<32x1xf32, #tpu.memory_space<vmem>>, vector<32x1xf32>
    %113 = vector.broadcast %112 : vector<32x1xf32> to vector<32x128xf32>
    %114 = arith.addf %111, %113 : vector<32x128xf32>
    %cst_76 = arith.constant 0.000000e+00 : f32
    %cst_77 = arith.constant 6.000000e+00 : f32
    %115 = vector.broadcast %cst_76 : f32 to vector<32x128xf32>
    %116 = arith.maximumf %115, %114 : vector<32x128xf32>
    %117 = vector.broadcast %cst_77 : f32 to vector<32x128xf32>
    %118 = arith.minimumf %117, %116 : vector<32x128xf32>
    %c0_78 = arith.constant 0 : index
    %c0_79 = arith.constant 0 : index
    %119 = vector.load %arg6[%c0_78, %c0_79] : memref<32x128xf32, #tpu.memory_space<vmem>>, vector<32x128xf32>
    tpu.vector_store %arg6[%c0_78, %c0_79], %118 {strides = array<i32>} : memref<32x128xf32, #tpu.memory_space<vmem>>, vector<32x128xf32>,
    return
  }
  func.func @transform_0(%arg0: i32) -> (i32, i32, i32) {
    %c0_i32 = arith.constant 0 : i32
    %c0_i32_0 = arith.constant 0 : i32
    %c0_i32_1 = arith.constant 0 : i32
    return %arg0, %c0_i32, %c0_i32_0 : i32, i32, i32
  }
  func.func @transform_1(%arg0: i32) -> (i32, i32) {
    %c0_i32 = arith.constant 0 : i32
    %c0_i32_0 = arith.constant 0 : i32
    %c0_i32_1 = arith.constant 0 : i32
    return %c0_i32, %c0_i32_0 : i32, i32
  }
  func.func @transform_2(%arg0: i32) -> (i32, i32) {
    %c0_i32 = arith.constant 0 : i32
    %c0_i32_0 = arith.constant 0 : i32
    %c0_i32_1 = arith.constant 0 : i32
    return %c0_i32, %c0_i32_0 : i32, i32
  }
  func.func @transform_3(%arg0: i32) -> (i32, i32) {
    %c0_i32 = arith.constant 0 : i32
    %c0_i32_0 = arith.constant 0 : i32
    %c0_i32_1 = arith.constant 0 : i32
    return %c0_i32, %c0_i32_0 : i32, i32
  }
  func.func @transform_4(%arg0: i32) -> (i32, i32) {
    %c0_i32 = arith.constant 0 : i32
    %c0_i32_0 = arith.constant 0 : i32
    %c0_i32_1 = arith.constant 0 : i32
    return %c0_i32, %c0_i32_0 : i32, i32
  }
  func.func @transform_5(%arg0: i32) -> (i32, i32) {
    %c0_i32 = arith.constant 0 : i32
    %c0_i32_0 = arith.constant 0 : i32
    return %c0_i32, %arg0 : i32, i32
  }
}

</mosaic_0001>

<bundles_post_ra>
// kernel: tpu_custom_call.1
= control target key start
LH: loop header
LB: loop body
LE: loop exit
PB: predicated region body
PF: predicated region fallthrough
CT: control target
= control target key end

     0   :  { %10 = vsyncpa [#allocation4], 0  ;;  %s1860_s0 = inlined_call_operand.vmem [shape: f32[2,3,256], index: 0, kind: input, shape index: {}]   ;;  %s1861_s1 = inlined_call_operand.vmem [shape: f32[32,27], index: 1, kind: input, shape index: {}]   ;;  %s1862_s2 = inlined_call_operand.vmem [shape: f32[32,1], index: 2, kind: input, shape index: {}]   ;;  %s1863_s3 = inlined_call_operand.vmem [shape: bf16[9,256], index: 3, kind: input, shape index: {}]   ;;  %s1864_s4 = inlined_call_operand.hbm [shape: bf16[512,128], index: 4, kind: input, shape index: {}]   ;;  %s1865_s5 = inlined_call_operand.hbm [shape: f32[32,128], index: 5, kind: output, shape index: {}]  }
   0x1   :  { %11 = vsyncpa [#allocation5], 0  ;;  %s24_s20 = sshll.u32 %s1864_s4, 4  ;;  %s1387_s21 = smov [#allocation3]   ;;  %s25_s20 = int_to_ptr.hbm [resolvable:$true] %s24_s20 }
   0x2   :  { %s26_s22 = sshll.u32 %s1387_s21, 4  ;;  %s1388_s23 = smov 64   ;;  %s27_s22 = int_to_ptr.vmem [resolvable:$true] %s26_s22 }
   0x3   :  { %s1389_s24 = smov 4  }
   0x4   :  { %32 = dma.hbm_to_vmem [thread:$0]  %s25_s20, 4096, %s27_s22, [#allocation4], %s1388_s23, %s1388_s23, %s1389_s24  }
   0x5   :  { %1383 = dma.done.wait [#allocation4], 4096  }
   0x6   :  { %1384 = vsyncadd [#allocation4], 4294963200  ;;  %v37_v0 = vld [vmem:[%s1860_s0] sm:$0x77]  ;;  %s1390_s4 = smov 15   ;;  %s1391_s27 = smov 127   ;;  %v48_v34 = vlaneseq }
   0x7   :  { %39 = vst [vmem:[#allocation1] ss:$2 sm:$0xff] %v37_v0  ;;  %s1392_s28 = smov 113   ;;  %s1393_s29 = smov 112   ;;  %v1057_v17 = vld [vmem:[%s1860_s0 + $0x8] sm:$0x77] }
   0x8   :  { %s1394_s7 = smov 111   ;;  %s1395_s8 = smov 17   ;;  %v101_v35 = vld [vmem:[%s1863_s3] sm:$0x22]  ;;  %v1477_v36 = vand.u32 127, %v48_v34  ;;  %vm501_vm6 = vcmask 1042432  }
   0x9   :  { %s1396_s0 = smov 16   ;;  %s1397_s9 = smov 1   ;;  %v102_v37 = vunpack.c.l.bf16 %v101_v35  ;;  %v103_v38 = vunpack.c.h.bf16 %v101_v35  ;;  %v165_v53 = vld [vmem:[%s1863_s3] sm:$0x44]  ;;  %v194_v59 = vld [vmem:[%s1863_s3] sm:$0x88] }
   0xa   :  { %vm98_vm0 = vcmp.lt.s32.totalorder %v1477_v36, 15  ;;  %v166_v54 = vunpack.c.l.bf16 %v165_v53  ;;  %v167_v55 = vunpack.c.h.bf16 %v165_v53  ;;  %vm162_vm1 = vcmp.lt.s32.totalorder %v1477_v36, 127  ;;  %v271_v34 = vld [vmem:[%s1863_s3] sm:$0x11] }
   0xb   :  { %v104_v41 = vperm.slane %v102_v37, 2  ;;  %v105_v42 = vperm.slane %v103_v38, 2  ;;  %vm191_vm2 = vcmp.lt.s32.totalorder %v1477_v36, 113  ;;  %vm218_vm3 = vcmp.lt.s32.totalorder %v1477_v36, 112 }
   0xc   :  { %v168_v56 = vperm.slane %v166_v54, 5  ;;  %v169_v57 = vperm.slane %v167_v55, 5  ;;  %vm245_vm4 = vcmp.lt.s32.totalorder %v1477_v36, 111  ;;  %vm50_vm5 = vcmp.lt.s32.totalorder %v1477_v36, 17 }
   0xd   :  { %vm71_vm7 = vcmp.lt.s32.totalorder %v1477_v36, 16  ;;  %vm127_vm8 = vcmp.lt.s32.totalorder %v1477_v36, 1  ;;  %vm488_vm9 = vcmask 220160  }
   0xe   :  { %v1438_v1 = vld.sshfl [vmem:[#allocation1] sm:$0xff pattern:$0x75316420]  ;;  %v1440_v2 = vld.sshfl [vmem:[#allocation1 + $0x8] sm:$0xff pattern:$0x75316420] }
   0xf   :  { %62 = vst [vmem:[#allocation1] ss:$2 sm:$0xff] %v37_v0 }
  0x16   :  { %v1442_v3 = vld.sshfl [vmem:[#allocation1] sm:$0xff pattern:$0x75316420]  ;;  %v1444_v4 = vld.sshfl [vmem:[#allocation1 + $0x8] sm:$0xff pattern:$0x75316420] }
  0x17   :  { %89 = vst [vmem:[#allocation1] ss:$2 sm:$0xff] %v37_v0 }
  0x1e   :  { %v90_v5 = vld.sshfl [vmem:[#allocation1] sm:$0xff pattern:$0x75316420]  ;;  %v91_v6 = vld.sshfl [vmem:[#allocation1 + $0x8] sm:$0xff pattern:$0x75316420] }
  0x1f   :  { %94 = vrot.lane.b32.xlu0 %v90_v5, %s1390_s4  ;;  %96 = vrot.lane.b32.xlu1 %v91_v6, %s1390_s4  ;;  %118 = vst [vmem:[#allocation1] ss:$2 sm:$0xff] %v37_v0 }
  0x26   :  { %v1448_v7 = vld.sshfl [vmem:[#allocation1] sm:$0xff pattern:$0x75316420]  ;;  %v1450_v8 = vld.sshfl [vmem:[#allocation1 + $0x8] sm:$0xff pattern:$0x75316420] }
  0x27   :  { %146 = vst [vmem:[#allocation1 + $0x1] ss:$2 sm:$0xff] %v37_v0 }
  0x2e   :  { %v147_v9 = vld.sshfl [vmem:[#allocation1] sm:$0xff pattern:$0x75316420]  ;;  %v148_v10 = vld.sshfl [vmem:[#allocation1 + $0x8] sm:$0xff pattern:$0x75316420] }
  0x2f   :  { %153 = vst [vmem:[#allocation1] ss:$2 sm:$0xff] %v37_v0 }
  0x30   :  { %151 = vst [vmem:[#allocation2 + $0x38] sm:$0x70] %v147_v9 }
  0x31   :  { %152 = vst [vmem:[#allocation2 + $0x28] sm:$0x70] %v148_v10 }
  0x36   :  { %v154_v11 = vld.sshfl [vmem:[#allocation1] sm:$0xff pattern:$0x75316420]  ;;  %v155_v12 = vld.sshfl [vmem:[#allocation1 + $0x8] sm:$0xff pattern:$0x75316420] }
  0x37   :  { %182 = vst [vmem:[#allocation1] ss:$2 sm:$0xff] %v37_v0  ;;  %160 = vrot.lane.b32.xlu0 %v155_v12, %s1391_s27  ;;  %158 = vrot.lane.b32.xlu2 %v154_v11, %s1391_s27 }
  0x3e   :  { %v183_v13 = vld.sshfl [vmem:[#allocation1] sm:$0xff pattern:$0x75316420]  ;;  %v184_v14 = vld.sshfl [vmem:[#allocation1 + $0x8] sm:$0xff pattern:$0x75316420] }
  0x3f   :  { %209 = vst [vmem:[#allocation1] ss:$2 sm:$0xff] %v37_v0  ;;  %187 = vrot.lane.b32.xlu1 %v183_v13, %s1392_s28  ;;  %189 = vrot.lane.b32.xlu2 %v184_v14, %s1392_s28 }
  0x46   :  { %v210_v15 = vld.sshfl [vmem:[#allocation1] sm:$0xff pattern:$0x75316420]  ;;  %v211_v16 = vld.sshfl [vmem:[#allocation1 + $0x8] sm:$0xff pattern:$0x75316420] }
  0x47   :  { %236 = vst [vmem:[#allocation1] ss:$2 sm:$0xff] %v37_v0  ;;  %214 = vrot.lane.b32.xlu0 %v210_v15, %s1393_s29  ;;  %216 = vrot.lane.b32.xlu1 %v211_v16, %s1393_s29 }
  0x4e   :  { %v237_v18 = vld.sshfl [vmem:[#allocation1] sm:$0xff pattern:$0x75316420]  ;;  %v238_v19 = vld.sshfl [vmem:[#allocation1 + $0x8] sm:$0xff pattern:$0x75316420] }
  0x4f   :  { %260 = vst [vmem:[#allocation1] ss:$2 sm:$0xff] %v1057_v17  ;;  %243 = vrot.lane.b32.xlu0 %v238_v19, %s1394_s7  ;;  %241 = vrot.lane.b32.xlu2 %v237_v18, %s1394_s7 }
  0x56   :  { %v261_v20 = vld.sshfl [vmem:[#allocation1] sm:$0xff pattern:$0x75316420]  ;;  %v262_v21 = vld.sshfl [vmem:[#allocation1 + $0x8] sm:$0xff pattern:$0x75316420] }
  0x57   :  { %280 = vst [vmem:[#allocation1] ss:$2 sm:$0xff] %v1057_v17  ;;  %265 = vrot.lane.b32.xlu1 %v261_v20, %s1395_s8  ;;  %267 = vrot.lane.b32.xlu2 %v262_v21, %s1395_s8  ;;  %v248_v20 = vld [vmem:[%s1863_s3 + $0x8] sm:$0x11] }
  0x5e   :  { %v281_v22 = vld.sshfl [vmem:[#allocation1] sm:$0xff pattern:$0x75316420]  ;;  %v282_v23 = vld.sshfl [vmem:[#allocation1 + $0x8] sm:$0xff pattern:$0x75316420] }
  0x5f   :  { %306 = vst [vmem:[#allocation1] ss:$2 sm:$0xff] %v1057_v17  ;;  %285 = vrot.lane.b32.xlu0 %v281_v22, %s1396_s0  ;;  %287 = vrot.lane.b32.xlu1 %v282_v23, %s1396_s0 }
  0x66   :  { %v307_v24 = vld.sshfl [vmem:[#allocation1] sm:$0xff pattern:$0x75316420]  ;;  %v308_v25 = vld.sshfl [vmem:[#allocation1 + $0x8] sm:$0xff pattern:$0x75316420] }
  0x67   :  { %334 = vst [vmem:[#allocation1] ss:$2 sm:$0xff] %v1057_v17  ;;  %313 = vrot.lane.b32.xlu0 %v308_v25, %s1390_s4  ;;  %311 = vrot.lane.b32.xlu2 %v307_v24, %s1390_s4 }
  0x6e   :  { %v336_v26 = vld.sshfl [vmem:[#allocation1 + $0x8] sm:$0xff pattern:$0x75316420]  ;;  %v335_v27 = vld.sshfl [vmem:[#allocation1] sm:$0xff pattern:$0x75316420] }
  0x6f   :  { %339 = vrot.lane.b32.xlu1 %v335_v27, %s1397_s9  ;;  %361 = vst [vmem:[#allocation1 + $0x1] ss:$2 sm:$0xff] %v1057_v17  ;;  %341 = vrot.lane.b32.xlu2 %v336_v26, %s1397_s9  ;;  %v249_v27 = vunpack.c.l.bf16 %v248_v20 }
  0x76   :  { %v362_v28 = vld.sshfl [vmem:[#allocation1] sm:$0xff pattern:$0x75316420]  ;;  %v363_v29 = vld.sshfl [vmem:[#allocation1 + $0x8] sm:$0xff pattern:$0x75316420] }
  0x77   :  { %368 = vst [vmem:[#allocation1] ss:$2 sm:$0xff] %v1057_v17 }
  0x78   :  { %366 = vst [vmem:[#allocation2 + $0x20] sm:$0x70] %v362_v28  ;;  %v250_v28 = vunpack.c.h.bf16 %v248_v20 }
  0x79   :  { %367 = vst [vmem:[#allocation2 + $0x68] sm:$0x70] %v363_v29 }
  0x7e   :  { %v369_v30 = vld.sshfl [vmem:[#allocation1] sm:$0xff pattern:$0x75316420]  ;;  %v370_v31 = vld.sshfl [vmem:[#allocation1 + $0x8] sm:$0xff pattern:$0x75316420] }
  0x7f   :  { %373 = vrot.lane.b32.xlu0 %v369_v30, %s1391_s27  ;;  %396 = vst [vmem:[#allocation1] ss:$2 sm:$0xff] %v1057_v17 }
  0x86   :  { %v397_v32 = vld.sshfl [vmem:[#allocation1] sm:$0xff pattern:$0x75316420]  ;;  %v398_v33 = vld.sshfl [vmem:[#allocation1 + $0x8] sm:$0xff pattern:$0x75316420] }
  0x87   :  { %375 = vrot.lane.b32.xlu0 %v370_v31, %s1391_s27  ;;  %401 = vrot.lane.b32.xlu1 %v397_v32, %s1392_s28  ;;  %422 = vst [vmem:[#allocation1] ss:$2 sm:$0xff] %v1057_v17  ;;  %v251_v31 = vperm.slane %v249_v27, 0  ;;  %v252_v32 = vperm.slane %v250_v28, 0 }
  0x8e   :  { %v423_v39 = vld.sshfl [vmem:[#allocation1] sm:$0xff pattern:$0x75316420]  ;;  %v424_v40 = vld.sshfl [vmem:[#allocation1 + $0x8] sm:$0xff pattern:$0x75316420] }
  0x8f   :  { %403 = vrot.lane.b32.xlu1 %v398_v33, %s1392_s28  ;;  %448 = vst [vmem:[#allocation1] ss:$2 sm:$0xff] %v1057_v17  ;;  %427 = vrot.lane.b32.xlu2 %v423_v39, %s1393_s29 }
  0x91   :  { %v95_v43 = vpop.permute.xlu0 %94  ;;  %v97_v44 = vpop.permute.xlu1 %96 }
  0x92   :  { %v99_v45 = vsel %vm98_vm0, %v95_v43, %v97_v44  ;;  %v100_v46 = vsel %vm98_vm0, %v97_v44, %v95_v43  ;;  %v159_v58 = vpop.permute.xlu2 %158 }
  0x93   :  { %v106_v47 = vmul.f32 %v104_v41, %v100_v46  ;;  %v107_v48 = vmul.f32 %v105_v42, %v99_v45  ;;  %v272_v41 = vunpack.c.l.bf16 %v271_v34  ;;  %v273_v42 = vunpack.c.h.bf16 %v271_v34  ;;  %v291_v45 = vld [vmem:[%s1863_s3] sm:$0x11]  ;;  %v379_v34 = vld [vmem:[%s1863_s3] sm:$0x44] }
  0x94   :  { %v293_v53 = vunpack.c.h.bf16 %v291_v45 }
  0x95   :  { %v110_v49 = vrot.slane %v106_v47, 2  ;;  %v111_v50 = vrot.slane %v107_v48, 2  ;;  %v274_v43 = vperm.slane %v272_v41, 0  ;;  %v275_v44 = vperm.slane %v273_v42, 0 }
  0x96   :  { %v450_v51 = vld.sshfl [vmem:[#allocation1 + $0x8] sm:$0xff pattern:$0x75316420]  ;;  %v449_v52 = vld.sshfl [vmem:[#allocation1] sm:$0xff pattern:$0x75316420]  ;;  %v381_v41 = vunpack.c.h.bf16 %v379_v34 }
  0x97   :  { %455 = vrot.lane.b32.xlu1 %v450_v51, %s1394_s7  ;;  %453 = vrot.lane.b32.xlu0 %v449_v52, %s1394_s7  ;;  %114 = vst [vmem:[#allocation2 + $0x60] sm:$0xc0] %v110_v49  ;;  %v292_v52 = vunpack.c.l.bf16 %v291_v45 }
  0x98   :  { %429 = vrot.lane.b32.xlu2 %v424_v40, %s1393_s29  ;;  %115 = vst [vmem:[#allocation2] sm:$0xc0] %v111_v50 }
  0x99   :  { %116 = vst [vmem:[#allocation2 + $0x38] sm:$0x1] %v110_v49 }
  0x9a   :  { %117 = vst [vmem:[#allocation2 + $0x28] sm:$0x1] %v111_v50 }
  0x9f   :  { %67 = vrot.lane.b32.xlu1 %v1442_v3, %s1396_s0  ;;  %125 = vrot.lane.b32.xlu0 %v1450_v8, %s1397_s9  ;;  %v190_v8 = vpop.permute.xlu2 %189 }
  0xa0   :  { %123 = vrot.lane.b32.xlu2 %v1448_v7, %s1397_s9  ;;  %v221_v7 = vld [vmem:[%s1863_s3] sm:$0x88]  ;;  %s1401_s9 = smov 8  }
  0xa1   :  { %v222_v14 = vunpack.c.l.bf16 %v221_v7  ;;  %v223_v15 = vunpack.c.h.bf16 %v221_v7 }
  0xa3   :  { %v224_v18 = vperm.slane %v222_v14, 7  ;;  %v225_v19 = vperm.slane %v223_v15, 7 }
  0xa7   :  { %46 = vrot.lane.b32.xlu1 %v1440_v2, %s1395_s8  ;;  %44 = vrot.lane.b32.xlu0 %v1438_v1, %s1395_s8  ;;  %v195_v1 = vunpack.c.l.bf16 %v194_v59  ;;  %v196_v2 = vunpack.c.h.bf16 %v194_v59  ;;  %v295_v59 = vperm.slane %v293_v53, 1  ;;  %s1044_s8 = sshll.u32 %s1865_s5, 4  ;;  %s1045_s8 = int_to_ptr.hbm [resolvable:$true] %s1044_s8 }
  0xa8   :  { %69 = vrot.lane.b32.xlu2 %v1444_v4, %s1396_s0  ;;  %s1400_s0 = smov 128  }
  0xa9   :  { %v161_v60 = vpop.permute.xlu0 %160  ;;  %v197_v4 = vperm.slane %v195_v1, 6  ;;  %v198_v6 = vperm.slane %v196_v2, 6  ;;  %v242_v33 = vpop.permute.xlu2 %241 }
  0xaa   :  { %v163_v61 = vsel %vm162_vm1, %v159_v58, %v161_v60  ;;  %v164_v62 = vsel %vm162_vm1, %v161_v60, %v159_v58  ;;  %v294_v58 = vperm.slane %v292_v52, 1  ;;  %v317_v60 = vld [vmem:[%s1863_s3] sm:$0x22] }
  0xab   :  { %v170_v63 = vmul.f32 %v168_v56, %v163_v61  ;;  %v171_v0 = vmul.f32 %v169_v57, %v164_v62 }
  0xad   :  { %v174_v3 = vrot.slane %v170_v63, 1  ;;  %v175_v5 = vrot.slane %v171_v0, 1 }
  0xaf   :  { %178 = vst [vmem:[#allocation2 + $0x38] sm:$0x80] %v174_v3 }
  0xb0   :  { %179 = vst [vmem:[#allocation2 + $0x28] sm:$0x80] %v175_v5 }
  0xb1   :  { %180 = vst [vmem:[#allocation2 + $0x30] sm:$0x3] %v174_v3  ;;  %v188_v9 = vpop.permute.xlu1 %187  ;;  %v268_v46 = vpop.permute.xlu2 %267  ;;  %v318_v3 = vunpack.c.l.bf16 %v317_v60 }
  0xb2   :  { %181 = vst [vmem:[#allocation2 + $0x58] sm:$0x3] %v175_v5  ;;  %v192_v10 = vsel %vm191_vm2, %v188_v9, %v190_v8  ;;  %v193_v11 = vsel %vm191_vm2, %v190_v8, %v188_v9  ;;  %v319_v5 = vunpack.c.h.bf16 %v317_v60 }
  0xb3   :  { %v199_v12 = vmul.f32 %v197_v4, %v192_v10  ;;  %v200_v13 = vmul.f32 %v198_v6, %v193_v11  ;;  %v320_v7 = vperm.slane %v318_v3, 2  ;;  %v345_v10 = vld [vmem:[%s1863_s3] sm:$0x22] }
  0xb4   :  { %v321_v8 = vperm.slane %v319_v5, 2 }
  0xb5   :  { %v203_v16 = vrot.slane %v199_v12, 6  ;;  %v204_v17 = vrot.slane %v200_v13, 6 }
  0xb7   :  { %207 = vst [vmem:[#allocation2 + $0x30] sm:$0x1c] %v203_v16  ;;  %v346_v16 = vunpack.c.l.bf16 %v345_v10 }
  0xb8   :  { %208 = vst [vmem:[#allocation2 + $0x58] sm:$0x1c] %v204_v17  ;;  %v347_v17 = vunpack.c.h.bf16 %v345_v10 }
  0xb9   :  { %v215_v21 = vpop.permute.xlu0 %214  ;;  %v217_v22 = vpop.permute.xlu1 %216 }
  0xba   :  { %v219_v23 = vsel %vm218_vm3, %v215_v21, %v217_v22  ;;  %v220_v24 = vsel %vm218_vm3, %v217_v22, %v215_v21  ;;  %v348_v21 = vperm.slane %v346_v16, 3  ;;  %v349_v22 = vperm.slane %v347_v17, 3 }
  0xbb   :  { %v226_v25 = vmul.f32 %v224_v18, %v219_v23  ;;  %v227_v26 = vmul.f32 %v225_v19, %v220_v24 }
  0xbd   :  { %v230_v29 = vrot.slane %v226_v25, 3  ;;  %v231_v30 = vrot.slane %v227_v26, 3 }
  0xbf   :  { %234 = vst [vmem:[#allocation2 + $0x30] sm:$0xe0] %v230_v29 }
  0xc0   :  { %235 = vst [vmem:[#allocation2 + $0x58] sm:$0xe0] %v231_v30 }
  0xc1   :  { %v244_v35 = vpop.permute.xlu0 %243  ;;  %v312_v9 = vpop.permute.xlu2 %311 }
  0xc2   :  { %v246_v37 = vsel %vm245_vm4, %v242_v33, %v244_v35  ;;  %v247_v38 = vsel %vm245_vm4, %v244_v35, %v242_v33 }
  0xc3   :  { %v253_v39 = vmul.f32 %v251_v31, %v246_v37  ;;  %v254_v40 = vmul.f32 %v252_v32, %v247_v38  ;;  %v433_v31 = vld [vmem:[%s1863_s3] sm:$0x88] }
  0xc4   :  { %v434_v32 = vunpack.c.l.bf16 %v433_v31  ;;  %v435_v33 = vunpack.c.h.bf16 %v433_v31 }
  0xc5   :  { %255 = vst [vmem:[#allocation2 + $0x8] sm:$0x7] %v253_v39 }
  0xc6   :  { %256 = vst [vmem:[#allocation2 + $0x18] sm:$0x7] %v254_v40  ;;  %v480_v55 = vld [vmem:[#allocation2 + $0x30] sm:$0xff]  ;;  %v436_v35 = vperm.slane %v434_v32, 7  ;;  %v437_v37 = vperm.slane %v435_v33, 7  ;;  %v380_v40 = vunpack.c.l.bf16 %v379_v34 }
  0xc7   :  { %v481_v57 = vld [vmem:[#allocation2 + $0x58] sm:$0xff] }
  0xc9   :  { %v266_v47 = vpop.permute.xlu1 %265  ;;  %v342_v20 = vpop.permute.xlu2 %341 }
  0xca   :  { %v269_v48 = vsel %vm50_vm5, %v266_v47, %v268_v46  ;;  %v270_v49 = vsel %vm50_vm5, %v268_v46, %v266_v47 }
  0xcb   :  { %v276_v50 = vmul.f32 %v274_v43, %v270_v49  ;;  %v277_v51 = vmul.f32 %v275_v44, %v269_v48  ;;  %v382_v48 = vperm.slane %v380_v40, 5  ;;  %v383_v49 = vperm.slane %v381_v41, 5 }
  0xcc   :  { %v484_v54 = vld [vmem:[#allocation2 + $0x8] sm:$0x7] }
  0xcd   :  { %278 = vst [vmem:[#allocation2 + $0x10] sm:$0x7] %v276_v50  ;;  %1058 = vmatpush.msk.msra.mxu0 %vm501_vm6, %v484_v54  ;;  %v485_v56 = vld [vmem:[#allocation2 + $0x18] sm:$0x7]  ;;  %v407_v50 = vld [vmem:[%s1863_s3] sm:$0x88] }
  0xce   :  { %279 = vst [vmem:[#allocation2 + $0x40] sm:$0x7] %v277_v51  ;;  %1063 = vmatpush.msk.msra.mxu1 %vm501_vm6, %v485_v56 }
  0xcf   :  { %527 = vmatpush.msra.mxu0 %v480_v55 }
  0xd0   :  { %556 = vmatpush.msra.mxu1 %v481_v57  ;;  %v408_v57 = vunpack.c.l.bf16 %v407_v50 }
  0xd1   :  { %v286_v61 = vpop.permute.xlu0 %285  ;;  %v288_v62 = vpop.permute.xlu1 %287 }
  0xd2   :  { %v289_v63 = vsel %vm71_vm7, %v286_v61, %v288_v62  ;;  %v290_v0 = vsel %vm71_vm7, %v288_v62, %v286_v61  ;;  %v410_v61 = vperm.slane %v408_v57, 6  ;;  %v468_v57 = vld [vmem:[%s1861_s1] sm:$0xff] }
  0xd3   :  { %v296_v1 = vmul.f32 %v294_v58, %v290_v0  ;;  %v297_v2 = vmul.f32 %v295_v59, %v289_v63  ;;  %v409_v58 = vunpack.c.h.bf16 %v407_v50  ;;  %v459_v63 = vld [vmem:[%s1863_s3 + $0x8] sm:$0x11] }
  0xd5   :  { %v300_v4 = vrot.slane %v296_v1, 5  ;;  %v301_v6 = vrot.slane %v297_v2, 5  ;;  %v411_v62 = vperm.slane %v409_v58, 6 }
  0xd7   :  { %304 = vst [vmem:[#allocation2 + $0x10] sm:$0x38] %v300_v4  ;;  %v460_v4 = vunpack.c.l.bf16 %v459_v63 }
  0xd8   :  { %305 = vst [vmem:[#allocation2 + $0x40] sm:$0x38] %v301_v6  ;;  %v461_v6 = vunpack.c.h.bf16 %v459_v63 }
  0xd9   :  { %v314_v11 = vpop.permute.xlu0 %313  ;;  %v462_v10 = vperm.slane %v460_v4, 0  ;;  %v470_v4 = vld [vmem:[%s1861_s1 + $0x10] sm:$0xff] }
  0xda   :  { %v315_v12 = vsel %vm98_vm0, %v312_v9, %v314_v11  ;;  %v316_v13 = vsel %vm98_vm0, %v314_v11, %v312_v9  ;;  %v463_v11 = vperm.slane %v461_v6, 0  ;;  %v471_v6 = vld [vmem:[%s1861_s1 + $0x18] sm:$0xff] }
  0xdb   :  { %v322_v14 = vmul.f32 %v320_v7, %v316_v13  ;;  %v323_v15 = vmul.f32 %v321_v8, %v315_v12  ;;  %v74_v12 = vld [vmem:[%s1863_s3] sm:$0x11]  ;;  %v130_v13 = vld [vmem:[%s1863_s3] sm:$0x22] }
  0xdd   :  { %v326_v18 = vrot.slane %v322_v14, 2  ;;  %v327_v19 = vrot.slane %v323_v15, 2 }
  0xdf   :  { %330 = vst [vmem:[#allocation2 + $0x10] sm:$0xc0] %v326_v18 }
  0xe0   :  { %331 = vst [vmem:[#allocation2 + $0x40] sm:$0xc0] %v327_v19 }
  0xe1   :  { %332 = vst [vmem:[#allocation2 + $0x20] sm:$0x1] %v326_v18  ;;  %v340_v23 = vpop.permute.xlu1 %339  ;;  %v75_v18 = vunpack.c.l.bf16 %v74_v12 }
  0xe2   :  { %333 = vst [vmem:[#allocation2 + $0x68] sm:$0x1] %v327_v19  ;;  %v343_v24 = vsel %vm127_vm8, %v340_v23, %v342_v20  ;;  %v344_v25 = vsel %vm127_vm8, %v342_v20, %v340_v23  ;;  %v76_v19 = vunpack.c.h.bf16 %v74_v12  ;;  %v132_v23 = vunpack.c.h.bf16 %v130_v13 }
  0xe3   :  { %v350_v26 = vmul.f32 %v348_v21, %v344_v25  ;;  %v351_v27 = vmul.f32 %v349_v22, %v343_v24  ;;  %v131_v22 = vunpack.c.l.bf16 %v130_v13  ;;  %v53_v24 = vld [vmem:[%s1863_s3] sm:$0x11] }
  0xe4   :  { %v54_v32 = vunpack.c.l.bf16 %v53_v24  ;;  %v55_v33 = vunpack.c.h.bf16 %v53_v24 }
  0xe5   :  { %v354_v28 = vrot.slane %v350_v26, 7  ;;  %v355_v29 = vrot.slane %v351_v27, 7  ;;  %v77_v26 = vperm.slane %v75_v18, 1  ;;  %v78_v27 = vperm.slane %v76_v19, 1 }
  0xe7   :  { %358 = vst [vmem:[#allocation2 + $0x20] sm:$0xe] %v354_v28  ;;  %v133_v28 = vperm.slane %v131_v22, 3  ;;  %v475_v63 = vld [vmem:[#allocation2 + $0x40] sm:$0xff] }
  0xe8   :  { %359 = vst [vmem:[#allocation2 + $0x68] sm:$0xe] %v355_v29  ;;  %v134_v29 = vperm.slane %v132_v23, 3 }
  0xe9   :  { %v428_v30 = vpop.permute.xlu2 %427 }
  0xf1   :  { %v374_v38 = vpop.permute.xlu0 %373 }
  0xf2   :  { %v430_v39 = vpop.permute.xlu2 %429 }
  0xf3   :  { %v431_v42 = vsel %vm218_vm3, %v428_v30, %v430_v39  ;;  %v432_v43 = vsel %vm218_vm3, %v430_v39, %v428_v30 }
  0xf4   :  { %v438_v44 = vmul.f32 %v436_v35, %v431_v42  ;;  %v439_v45 = vmul.f32 %v437_v37, %v432_v43 }
  0xf6   :  { %v442_v46 = vrot.slane %v438_v44, 3  ;;  %v443_v47 = vrot.slane %v439_v45, 3 }
  0xf8   :  { %446 = vst [vmem:[#allocation2 + $0x50] sm:$0xe0] %v442_v46 }
  0xf9   :  { %v376_v51 = vpop.permute.xlu0 %375  ;;  %v402_v52 = vpop.permute.xlu1 %401  ;;  %447 = vst [vmem:[#allocation2 + $0x70] sm:$0xe0] %v443_v47 }
  0xfa   :  { %v377_v53 = vsel %vm162_vm1, %v374_v38, %v376_v51  ;;  %v378_v54 = vsel %vm162_vm1, %v376_v51, %v374_v38  ;;  %v124_v9 = vpop.permute.xlu2 %123  ;;  %v56_v51 = vperm.slane %v54_v32, 0 }
  0xfb   :  { %v384_v55 = vmul.f32 %v382_v48, %v377_v53  ;;  %v385_v56 = vmul.f32 %v383_v49, %v378_v54 }
  0xfd   :  { %v388_v59 = vrot.slane %v384_v55, 1  ;;  %v389_v60 = vrot.slane %v385_v56, 1 }
  0xff   :  { %392 = vst [vmem:[#allocation2 + $0x20] sm:$0x80] %v388_v59 }
 0x100   :  { %393 = vst [vmem:[#allocation2 + $0x68] sm:$0x80] %v389_v60 }
 0x101   :  { %394 = vst [vmem:[#allocation2 + $0x50] sm:$0x3] %v388_v59  ;;  %v404_v0 = vpop.permute.xlu1 %403 }
 0x102   :  { %395 = vst [vmem:[#allocation2 + $0x70] sm:$0x3] %v389_v60  ;;  %v405_v1 = vsel %vm191_vm2, %v402_v52, %v404_v0  ;;  %v406_v2 = vsel %vm191_vm2, %v404_v0, %v402_v52  ;;  %v70_v25 = vpop.permute.xlu2 %69  ;;  %v57_v52 = vperm.slane %v55_v33, 0  ;;  %v474_v60 = vld [vmem:[#allocation2 + $0x10] sm:$0xff] }
 0x103   :  { %v412_v3 = vmul.f32 %v410_v61, %v405_v1  ;;  %v413_v5 = vmul.f32 %v411_v62, %v406_v2  ;;  %v469_v2 = vld [vmem:[%s1861_s1 + $0x8] sm:$0xff] }
 0x105   :  { %v416_v7 = vrot.slane %v412_v3, 6  ;;  %v417_v8 = vrot.slane %v413_v5, 6 }
 0x106   :  { %v478_v53 = vld [vmem:[#allocation2 + $0x20] sm:$0xff] }
 0x107   :  { %420 = vst [vmem:[#allocation2 + $0x50] sm:$0x1c] %v416_v7  ;;  %v479_v55 = vld [vmem:[#allocation2 + $0x68] sm:$0xff] }
 0x108   :  { %421 = vst [vmem:[#allocation2 + $0x70] sm:$0x1c] %v417_v8 }
 0x109   :  { %v456_v14 = vpop.permute.xlu1 %455  ;;  %v454_v15 = vpop.permute.xlu0 %453 }
 0x10a   :  { %v457_v16 = vsel %vm245_vm4, %v454_v15, %v456_v14  ;;  %v458_v17 = vsel %vm245_vm4, %v456_v14, %v454_v15 }
 0x10b   :  { %v464_v20 = vmul.f32 %v462_v10, %v457_v16  ;;  %v465_v21 = vmul.f32 %v463_v11, %v458_v17 }
 0x10d   :  { %466 = vst [vmem:[#allocation2 + $0x78] sm:$0x7] %v464_v20 }
 0x10e   :  { %467 = vst [vmem:[#allocation2 + $0x48] sm:$0x7] %v465_v21  ;;  %v482_v49 = vld [vmem:[#allocation2 + $0x50] sm:$0xff] }
 0x10f   :  { %v483_v50 = vld [vmem:[#allocation2 + $0x70] sm:$0xff] }
 0x111   :  { %v68_v30 = vpop.permute.xlu1 %67  ;;  %v126_v31 = vpop.permute.xlu0 %125 }
 0x112   :  { %v72_v34 = vsel %vm71_vm7, %v68_v30, %v70_v25  ;;  %v73_v35 = vsel %vm71_vm7, %v70_v25, %v68_v30  ;;  %v128_v37 = vsel %vm127_vm8, %v124_v9, %v126_v31  ;;  %v129_v38 = vsel %vm127_vm8, %v126_v31, %v124_v9 }
 0x113   :  { %v79_v39 = vmul.f32 %v77_v26, %v73_v35  ;;  %v80_v40 = vmul.f32 %v78_v27, %v72_v34  ;;  %v135_v41 = vmul.f32 %v133_v28, %v129_v38  ;;  %v136_v42 = vmul.f32 %v134_v29, %v128_v37  ;;  %v1212_v35 = vld [vmem:[#allocation3 + $0x38] sm:$0xff]   ;;  %v1211_v37 = vld [vmem:[#allocation3 + $0x30] sm:$0xff]  }
 0x114   :  { %v486_v43 = vld [vmem:[#allocation2 + $0x78] sm:$0x7] }
 0x115   :  { %v83_v44 = vrot.slane %v79_v39, 5  ;;  %v84_v45 = vrot.slane %v80_v40, 5  ;;  %v139_v46 = vrot.slane %v135_v41, 7  ;;  %1068 = vmatpush.msk.msra.mxu2 %vm501_vm6, %v486_v43  ;;  %v487_v47 = vld [vmem:[#allocation2 + $0x48] sm:$0x7]  ;;  %v140_v48 = vrot.slane %v136_v42, 7 }
 0x116   :  { %1073 = vmatpush.msk.msra.mxu3 %vm501_vm6, %v487_v47  ;;  %v1109_v40 = vunpack.c.h.bf16 %v1212_v35  ;;  %v1108_v41 = vunpack.c.l.bf16 %v1212_v35  ;;  %v1105_v42 = vunpack.c.h.bf16 %v1211_v37 }
 0x117   :  { %87 = vst [vmem:[#allocation2 + $0x60] sm:$0x38] %v83_v44  ;;  %585 = vmatpush.msra.mxu2 %v482_v49 }
 0x118   :  { %88 = vst [vmem:[#allocation2] sm:$0x38] %v84_v45  ;;  %614 = vmatpush.msra.mxu3 %v483_v50 }
 0x119   :  { %143 = vst [vmem:[#allocation2 + $0x38] sm:$0xe] %v139_v46  ;;  %v47_v54 = vpop.permute.xlu1 %46  ;;  %v45_v56 = vpop.permute.xlu0 %44  ;;  %586 = vmatpush.msra.mxu2 %v478_v53  ;;  %v1228_v53 = vld [vmem:[#allocation3 + $0xb8] sm:$0xff]  }
 0x11a   :  { %144 = vst [vmem:[#allocation2 + $0x28] sm:$0xe] %v140_v48  ;;  %615 = vmatpush.msra.mxu3 %v479_v55  ;;  %v51_v58 = vsel %vm50_vm5, %v45_v56, %v47_v54  ;;  %v52_v59 = vsel %vm50_vm5, %v47_v54, %v45_v56  ;;  %v1705_v54 = vld [vmem:[#allocation3 + $0x78] sm:$0xff]   ;;  %v1104_v55 = vunpack.c.l.bf16 %v1211_v37 }
 0x11b   :  { %v58_v61 = vmul.f32 %v56_v51, %v52_v59  ;;  %v59_v62 = vmul.f32 %v57_v52, %v51_v58  ;;  %587 = vmatpush.msra.mxu2 %v474_v60  ;;  %v1210_v52 = vld [vmem:[#allocation3 + $0x28] sm:$0xff]   ;;  %v1707_v56 = vld [vmem:[#allocation3 + $0xf8] sm:$0xff]   ;;  %v1209_v60 = vld [vmem:[#allocation3 + $0x20] sm:$0xff]  }
 0x11c   :  { %616 = vmatpush.msra.mxu3 %v475_v63  ;;  %1069 = vmatmul.msk.f32.vlgmr.msra.gmra.mxu2 %vm488_vm9, %v468_v57  ;;  %v1101_v63 = vunpack.c.h.bf16 %v1210_v52 }
 0x11d   :  { %60 = vst [vmem:[#allocation2 + $0x60] sm:$0x7] %v58_v61  ;;  %1074 = vmatmul.msk.f32.vlgmr.msra.gmra.mxu3 %vm488_vm9, %v468_v57 }
 0x11e   :  { %61 = vst [vmem:[#allocation2] sm:$0x7] %v59_v62 }
 0x120   :  { %v476_v0 = vld [vmem:[#allocation2 + $0x38] sm:$0xff] }
 0x121   :  { %528 = vmatpush.msra.mxu0 %v476_v0  ;;  %v477_v1 = vld [vmem:[#allocation2 + $0x28] sm:$0xff]  ;;  %v1173_v0 = vunpack.c.h.bf16 %v1228_v53 }
 0x122   :  { %557 = vmatpush.msra.mxu1 %v477_v1  ;;  %v1141_v1 = vunpack.c.h.bf16 %v1705_v54 }
 0x123   :  { %968 = vmatpush.msrb.mxu2 %v1173_v0 }
 0x124   :  { %v472_v3 = vld [vmem:[#allocation2 + $0x60] sm:$0xff]  ;;  %1070 = vmatmul.msk.f32.gmra.mxu2 %vm488_vm9, %v469_v2 }
 0x125   :  { %529 = vmatpush.msra.mxu0 %v472_v3  ;;  %v473_v5 = vld [vmem:[#allocation2] sm:$0xff]  ;;  %1075 = vmatmul.msk.f32.gmra.mxu3 %vm488_vm9, %v469_v2 }
 0x126   :  { %558 = vmatpush.msra.mxu1 %v473_v5  ;;  %1059 = vmatmul.msk.f32.vlgmr.msra.gmra.mxu0 %vm488_vm9, %v468_v57  ;;  %v1205_v5 = vunpack.c.h.bf16 %v1707_v56 }
 0x127   :  { %1064 = vmatmul.msk.f32.vlgmr.msra.gmra.mxu1 %vm488_vm9, %v468_v57  ;;  %910 = vmatpush.msrb.mxu0 %v1109_v40 }
 0x128   :  { %939 = vmatpush.msrb.mxu1 %v1141_v1  ;;  %997 = vmatpush.msrb.mxu3 %v1205_v5 }
 0x129   :  { %911 = vmatpush.msrb.mxu0 %v1108_v41 }
 0x12b   :  { %912 = vmatpush.msrb.mxu0 %v1105_v42 }
 0x12c   :  { %1071 = vmatmul.msk.f32.gmra.mxu2 %vm488_vm9, %v470_v4 }
 0x12d   :  { %1076 = vmatmul.msk.f32.gmra.mxu3 %vm488_vm9, %v470_v4  ;;  %913 = vmatpush.msrb.mxu0 %v1104_v55 }
 0x12e   :  { %1060 = vmatmul.msk.f32.gmra.mxu0 %vm488_vm9, %v469_v2 }
 0x12f   :  { %1065 = vmatmul.msk.f32.gmra.mxu1 %vm488_vm9, %v469_v2  ;;  %914 = vmatpush.msrb.mxu0 %v1101_v63 }
 0x134   :  { %1072 = vmatmul.msk.f32.gmra.mxu2 %vm488_vm9, %v471_v6 }
 0x135   :  { %1077 = vmatmul.msk.f32.gmra.mxu3 %vm488_vm9, %v471_v6 }
 0x136   :  { %1061 = vmatmul.msk.f32.gmra.mxu0 %vm488_vm9, %v470_v4 }
 0x137   :  { %1066 = vmatmul.msk.f32.gmra.mxu1 %vm488_vm9, %v470_v4  ;;  %v1172_v4 = vunpack.c.l.bf16 %v1228_v53 }
 0x139   :  { %969 = vmatpush.msrb.mxu2 %v1172_v4 }
 0x13e   :  { %1062 = vmatmul.msk.f32.gmra.mxu0 %vm488_vm9, %v471_v6 }
 0x13f   :  { %1067 = vmatmul.msk.f32.gmra.mxu1 %vm488_vm9, %v471_v6  ;;  %v1100_v6 = vunpack.c.l.bf16 %v1210_v52  ;;  %v1206_v52 = vld [vmem:[#allocation3 + $0x8] sm:$0xff]  }
 0x141   :  { %915 = vmatpush.msrb.mxu0 %v1100_v6  ;;  %v1204_v6 = vunpack.c.l.bf16 %v1707_v56  ;;  %v1218_v56 = vld [vmem:[#allocation3 + $0x68] sm:$0xff]  }
 0x143   :  { %998 = vmatpush.msrb.mxu3 %v1204_v6  ;;  %v1222_v6 = vld [vmem:[#allocation3 + $0x88] sm:$0xff]  }
 0x19f   :  { %v589_v7 = vpop.f32.mrf.mxu2 }
 0x1a0   :  { %v618_v8 = vpop.f32.mrf.mxu3 }
 0x1a3   :  { %v531_v9 = vpop.f32.mrf.mxu0 }
 0x1a4   :  { %v560_v10 = vpop.f32.mrf.mxu1  ;;  %v1252_v11 = vpack.i.bf16 %v589_v7, %v531_v9 }
 0x1a5   :  { %v1257_v12 = vpack.i.bf16 %v560_v10, %v618_v8 }
 0x1a6   :  { %1253 = vrot.lane.b32.xlu2 %v1252_v11, %s1391_s27 }
 0x1a7   :  { %1258 = vrot.lane.b32.xlu0 %v1257_v12, %s1391_s27  ;;  %v1647_v13 = vpop.f32.mrf.mxu2 }
 0x1a8   :  { %v1649_v14 = vpop.f32.mrf.mxu3 }
 0x1ab   :  { %v1651_v15 = vpop.f32.mrf.mxu0 }
 0x1ac   :  { %v1653_v16 = vpop.f32.mrf.mxu1  ;;  %v1262_v17 = vpack.i.bf16 %v1647_v13, %v1651_v15 }
 0x1ad   :  { %v1267_v18 = vpack.i.bf16 %v1653_v16, %v1649_v14 }
 0x1ae   :  { %1263 = vrot.lane.b32.xlu1 %v1262_v17, %s1391_s27 }
 0x1af   :  { %1268 = vrot.lane.b32.xlu2 %v1267_v18, %s1391_s27  ;;  %v1663_v20 = vpop.f32.mrf.mxu2 }
 0x1b0   :  { %v1661_v19 = vpop.f32.mrf.mxu3 }
 0x1b3   :  { %v1665_v21 = vpop.f32.mrf.mxu0 }
 0x1b4   :  { %v1667_v22 = vpop.f32.mrf.mxu1  ;;  %v1272_v23 = vpack.i.bf16 %v1663_v20, %v1665_v21 }
 0x1b5   :  { %v1277_v24 = vpack.i.bf16 %v1667_v22, %v1661_v19 }
 0x1b6   :  { %1273 = vrot.lane.b32.xlu0 %v1272_v23, %s1391_s27 }
 0x1b7   :  { %1278 = vrot.lane.b32.xlu1 %v1277_v24, %s1391_s27  ;;  %v1675_v25 = vpop.f32.mrf.mxu2  ;;  %v1208_v24 = vld [vmem:[#allocation3 + $0x18] sm:$0xff]  }
 0x1b8   :  { %v1677_v26 = vpop.f32.mrf.mxu3  ;;  %v1092_v37 = vunpack.c.l.bf16 %v1208_v24 }
 0x1bb   :  { %v1679_v27 = vpop.f32.mrf.mxu0 }
 0x1bc   :  { %v1681_v28 = vpop.f32.mrf.mxu1  ;;  %v1282_v29 = vpack.i.bf16 %v1675_v25, %v1679_v27 }
 0x1bd   :  { %v1287_v30 = vpack.i.bf16 %v1681_v28, %v1677_v26 }
 0x1be   :  { %1283 = vrot.lane.b32.xlu2 %v1282_v29, %s1391_s27 }
 0x1bf   :  { %1288 = vrot.lane.b32.xlu0 %v1287_v30, %s1391_s27  ;;  %v1096_v30 = vunpack.c.l.bf16 %v1209_v60 }
 0x200   :  { %v1254_v31 = vpop.permute.xlu2 %1253 }
 0x201   :  { %v1256_v32 = vunpack.i.h.bf16 %v1254_v31  ;;  %v1255_v33 = vunpack.i.l.bf16 %v1254_v31  ;;  %v1207_v31 = vld [vmem:[#allocation3 + $0x10] sm:$0xff]  }
 0x202   :  { %v1088_v53 = vunpack.c.l.bf16 %v1207_v31 }
 0x209   :  { %v1269_v43 = vpop.permute.xlu2 %1268 }
 0x20a   :  { %v1271_v57 = vunpack.i.h.bf16 %v1269_v43  ;;  %v1270_v61 = vunpack.i.l.bf16 %v1269_v43 }
 0x219   :  { %v1259_v34 = vpop.permute.xlu0 %1258 }
 0x21a   :  { %v1261_v38 = vunpack.i.h.bf16 %v1259_v34  ;;  %v1260_v39 = vunpack.i.l.bf16 %v1259_v34 }
 0x21c   :  { %v662_v44 = vsel %vm162_vm1, %v1256_v32, %v1260_v39  ;;  %v666_v45 = vsel %vm162_vm1, %v1261_v38, %v1256_v32  ;;  %v670_v46 = vsel %vm162_vm1, %v1255_v33, %v1261_v38  ;;  %v674_v47 = vsel %vm162_vm1, %v1260_v39, %v1255_v33 }
 0x21d   :  { %v1697_v48 = vmax.f32 %v589_v7, %v662_v44  ;;  %v1699_v49 = vmax.f32 %v618_v8, %v674_v47  ;;  %v1701_v50 = vmax.f32 %v531_v9, %v670_v46  ;;  %v1703_v51 = vmax.f32 %v560_v10, %v666_v45  ;;  %v1284_v47 = vpop.permute.xlu2 %1283 }
 0x21e   :  { %v1097_v7 = vunpack.c.h.bf16 %v1209_v60  ;;  %v1089_v38 = vunpack.c.h.bf16 %v1207_v31 }
 0x21f   :  { %v1292_v58 = vpack.i.bf16 %v1699_v49, %v1697_v48  ;;  %v1297_v59 = vpack.i.bf16 %v1703_v51, %v1701_v50 }
 0x220   :  { %v1264_v62 = vpop.permute.xlu1 %1263  ;;  %916 = vmatpush.msrb.mxu0 %v1097_v7  ;;  %v1079_v7 = vld [vmem:[#allocation3] sm:$0xff]  }
 0x221   :  { %1293 = vrot.lane.b32.xlu1 %v1292_v58, %s1393_s29  ;;  %v1266_v2 = vunpack.i.h.bf16 %v1264_v62  ;;  %v1265_v3 = vunpack.i.l.bf16 %v1264_v62  ;;  %1298 = vrot.lane.b32.xlu2 %v1297_v59, %s1393_s29  ;;  %v1285_v58 = vunpack.i.l.bf16 %v1284_v47 }
 0x222   :  { %917 = vmatpush.msrb.mxu0 %v1096_v30 }
 0x223   :  { %v663_v8 = vsel %vm162_vm1, %v1266_v2, %v1270_v61  ;;  %v667_v9 = vsel %vm162_vm1, %v1271_v57, %v1266_v2  ;;  %v671_v10 = vsel %vm162_vm1, %v1265_v3, %v1271_v57  ;;  %v675_v11 = vsel %vm162_vm1, %v1270_v61, %v1265_v3 }
 0x224   :  { %v1726_v12 = vmax.f32 %v1651_v15, %v671_v10  ;;  %v1729_v17 = vmax.f32 %v1653_v16, %v667_v9  ;;  %v1732_v18 = vmax.f32 %v1647_v13, %v663_v8  ;;  %v1735_v23 = vmax.f32 %v1649_v14, %v675_v11  ;;  %v1219_v8 = vld [vmem:[#allocation3 + $0x70] sm:$0xff]  }
 0x225   :  { %v1093_v13 = vunpack.c.h.bf16 %v1208_v24  ;;  %v1286_v57 = vunpack.i.h.bf16 %v1284_v47  ;;  %v1081_v9 = vunpack.c.h.bf16 %v1079_v7  ;;  %v1137_v10 = vunpack.c.h.bf16 %v1219_v8  ;;  %v1235_v11 = vld [vmem:[#allocation3 + $0xf0] sm:$0xff]  }
 0x226   :  { %v1307_v29 = vpack.i.bf16 %v1729_v17, %v1726_v12  ;;  %v1302_v15 = vpack.i.bf16 %v1735_v23, %v1732_v18  ;;  %v1136_v30 = vunpack.c.l.bf16 %v1219_v8 }
 0x227   :  { %918 = vmatpush.msrb.mxu0 %v1093_v13  ;;  %v1234_v13 = vld [vmem:[#allocation3 + $0xe8] sm:$0xff]  }
 0x228   :  { %1303 = vrot.lane.b32.xlu0 %v1302_v15, %s1393_s29  ;;  %v1274_v16 = vpop.permute.xlu0 %1273  ;;  %v1080_v15 = vunpack.c.l.bf16 %v1079_v7 }
 0x229   :  { %v1279_v14 = vpop.permute.xlu1 %1278  ;;  %1308 = vrot.lane.b32.xlu1 %v1307_v29, %s1393_s29  ;;  %v1276_v32 = vunpack.i.h.bf16 %v1274_v16  ;;  %v1275_v33 = vunpack.i.l.bf16 %v1274_v16  ;;  %919 = vmatpush.msrb.mxu0 %v1092_v37  ;;  %v1201_v29 = vunpack.c.h.bf16 %v1235_v11  ;;  %v1200_v16 = vunpack.c.l.bf16 %v1235_v11  ;;  %v1233_v37 = vld [vmem:[#allocation3 + $0xe0] sm:$0xff]  }
 0x22a   :  { %v1281_v34 = vunpack.i.h.bf16 %v1279_v14  ;;  %v1280_v35 = vunpack.i.l.bf16 %v1279_v14  ;;  %v1133_v14 = vunpack.c.h.bf16 %v1218_v56  ;;  %v1193_v47 = vunpack.c.h.bf16 %v1233_v37 }
 0x22b   :  { %920 = vmatpush.msrb.mxu0 %v1089_v38  ;;  %999 = vmatpush.msrb.mxu3 %v1201_v29  ;;  %v1132_v38 = vunpack.c.l.bf16 %v1218_v56  ;;  %v1149_v11 = vunpack.c.h.bf16 %v1222_v6  ;;  %v1213_v56 = vld [vmem:[#allocation3 + $0x40] sm:$0xff]  }
 0x22c   :  { %v664_v39 = vsel %vm162_vm1, %v1276_v32, %v1280_v35  ;;  %v668_v40 = vsel %vm162_vm1, %v1281_v34, %v1276_v32  ;;  %v672_v41 = vsel %vm162_vm1, %v1275_v33, %v1281_v34  ;;  %v676_v42 = vsel %vm162_vm1, %v1280_v35, %v1275_v33  ;;  %v1225_v34 = vld [vmem:[#allocation3 + $0xa0] sm:$0xff]  }
 0x22d   :  { %v1752_v43 = vmax.f32 %v1665_v21, %v672_v41  ;;  %v1755_v44 = vmax.f32 %v1667_v22, %v668_v40  ;;  %v1758_v45 = vmax.f32 %v1663_v20, %v664_v39  ;;  %v1761_v46 = vmax.f32 %v1661_v19, %v676_v42  ;;  %921 = vmatpush.msrb.mxu0 %v1088_v53  ;;  %v1217_v35 = vld [vmem:[#allocation3 + $0x60] sm:$0xff]   ;;  %v1216_v53 = vld [vmem:[#allocation3 + $0x58] sm:$0xff]  }
 0x22e   :  { %v1085_v22 = vunpack.c.h.bf16 %v1206_v52  ;;  %v1197_v32 = vunpack.c.h.bf16 %v1234_v13  ;;  %1000 = vmatpush.msrb.mxu3 %v1200_v16  ;;  %v1196_v39 = vunpack.c.l.bf16 %v1234_v13  ;;  %v1398_v40 = vmov 0   ;;  %v1229_v13 = vld [vmem:[#allocation3 + $0xc0] sm:$0xff]  }
 0x22f   :  { %v1317_v55 = vpack.i.bf16 %v1755_v44, %v1752_v43  ;;  %v1312_v21 = vpack.i.bf16 %v1761_v46, %v1758_v45  ;;  %1332 = vset.pattern.permute.xlu0 %v1398_v40  ;;  %v1161_v41 = vunpack.c.h.bf16 %v1225_v34  ;;  %v1129_v42 = vunpack.c.h.bf16 %v1217_v35  ;;  %1333 = vset.pattern.permute.xlu1 %v1398_v40 }
 0x230   :  { %922 = vmatpush.msrb.mxu0 %v1085_v22  ;;  %1001 = vmatpush.msrb.mxu3 %v1197_v32  ;;  %v1177_v32 = vunpack.c.h.bf16 %v1229_v13 }
 0x231   :  { %v1289_v59 = vpop.permute.xlu0 %1288  ;;  %1318 = vrot.lane.b32.xlu0 %v1317_v55, %s1393_s29  ;;  %1313 = vrot.lane.b32.xlu2 %v1312_v21, %s1393_s29  ;;  %v1160_v55 = vunpack.c.l.bf16 %v1225_v34  ;;  %v1128_v21 = vunpack.c.l.bf16 %v1217_v35  ;;  %v1112_v34 = vunpack.c.l.bf16 %v1213_v56  ;;  %v1176_v35 = vunpack.c.l.bf16 %v1229_v13 }
 0x232   :  { %v1291_v19 = vunpack.i.h.bf16 %v1289_v59  ;;  %v1290_v20 = vunpack.i.l.bf16 %v1289_v59  ;;  %1002 = vmatpush.msrb.mxu3 %v1196_v39  ;;  %1334 = vset.pattern.permute.xlu2 %v1398_v40  ;;  %v1125_v59 = vunpack.c.h.bf16 %v1216_v53 }
 0x234   :  { %v665_v60 = vsel %vm162_vm1, %v1286_v57, %v1290_v20  ;;  %v669_v61 = vsel %vm162_vm1, %v1291_v19, %v1286_v57  ;;  %v673_v62 = vsel %vm162_vm1, %v1285_v58, %v1291_v19  ;;  %v677_v63 = vsel %vm162_vm1, %v1290_v20, %v1285_v58  ;;  %v1232_v57 = vld [vmem:[#allocation3 + $0xd8] sm:$0xff]   ;;  %1003 = vmatpush.msrb.mxu3 %v1193_v47  ;;  %v889_v47 = vld [vmem:[%s1862_s2 + $0x18] sm:$0xff] }
 0x235   :  { %v1778_v0 = vmax.f32 %v1675_v25, %v665_v60  ;;  %v1781_v1 = vmax.f32 %v1677_v26, %v677_v63  ;;  %v1784_v2 = vmax.f32 %v1679_v27, %v673_v62  ;;  %v1787_v3 = vmax.f32 %v1681_v28, %v669_v61  ;;  %v1227_v27 = vld [vmem:[#allocation3 + $0xb0] sm:$0xff]   ;;  %v886_v62 = vld [vmem:[%s1862_s2] sm:$0xff] }
 0x236   :  { %v1084_v25 = vunpack.c.l.bf16 %v1206_v52  ;;  %v1140_v26 = vunpack.c.l.bf16 %v1705_v54  ;;  %v1169_v28 = vunpack.c.h.bf16 %v1227_v27  ;;  %v1168_v24 = vunpack.c.l.bf16 %v1227_v27  ;;  %v1226_v54 = vld [vmem:[#allocation3 + $0xa8] sm:$0xff]   ;;  %v1224_v52 = vld [vmem:[#allocation3 + $0x98] sm:$0xff]   ;;  %v1223_v63 = vld [vmem:[#allocation3 + $0x90] sm:$0xff]  }
 0x237   :  { %v1322_v5 = vpack.i.bf16 %v1781_v1, %v1778_v0  ;;  %v1327_v4 = vpack.i.bf16 %v1787_v3, %v1784_v2  ;;  %v1165_v31 = vunpack.c.h.bf16 %v1226_v54  ;;  %v1164_v33 = vunpack.c.l.bf16 %v1226_v54  ;;  %v1214_v27 = vld [vmem:[#allocation3 + $0x48] sm:$0xff]   ;;  %v1221_v54 = vld [vmem:[#allocation3 + $0x80] sm:$0xff]  }
 0x238   :  { %923 = vmatpush.msrb.mxu0 %v1084_v25  ;;  %940 = vmatpush.msrb.mxu1 %v1140_v26  ;;  %v1192_v58 = vunpack.c.l.bf16 %v1233_v37  ;;  %v1157_v22 = vunpack.c.h.bf16 %v1224_v52  ;;  %v1189_v19 = vunpack.c.h.bf16 %v1232_v57  ;;  %v1156_v20 = vunpack.c.l.bf16 %v1224_v52  ;;  %v1231_v26 = vld [vmem:[#allocation3 + $0xd0] sm:$0xff]   ;;  %v888_v52 = vld [vmem:[%s1862_s2 + $0x10] sm:$0xff] }
 0x239   :  { %1323 = vrot.lane.b32.xlu1 %v1322_v5, %s1393_s29  ;;  %1328 = vrot.lane.b32.xlu2 %v1327_v4, %s1393_s29  ;;  %v1124_v60 = vunpack.c.l.bf16 %v1216_v53  ;;  %v1188_v61 = vunpack.c.l.bf16 %v1232_v57  ;;  %v1215_v5 = vld [vmem:[#allocation3 + $0x50] sm:$0xff]   ;;  %v1153_v4 = vunpack.c.h.bf16 %v1223_v63  ;;  %v1185_v7 = vunpack.c.h.bf16 %v1231_v26 }
 0x23a   :  { %970 = vmatpush.msrb.mxu2 %v1169_v28  ;;  %924 = vmatpush.msrb.mxu0 %v1081_v9  ;;  %v1121_v25 = vunpack.c.h.bf16 %v1215_v5  ;;  %v1152_v8 = vunpack.c.l.bf16 %v1223_v63  ;;  %v1120_v28 = vunpack.c.l.bf16 %v1215_v5  ;;  %v1230_v9 = vld [vmem:[#allocation3 + $0xc8] sm:$0xff]  }
 0x23b   :  { %941 = vmatpush.msrb.mxu1 %v1137_v10  ;;  %1004 = vmatpush.msrb.mxu3 %v1192_v58  ;;  %v1184_v10 = vunpack.c.l.bf16 %v1231_v26  ;;  %v1181_v29 = vunpack.c.h.bf16 %v1230_v9  ;;  %v1180_v16 = vunpack.c.l.bf16 %v1230_v9 }
 0x23c   :  { %971 = vmatpush.msrb.mxu2 %v1168_v24  ;;  %925 = vmatpush.msrb.mxu0 %v1080_v15  ;;  %v1117_v24 = vunpack.c.h.bf16 %v1214_v27  ;;  %v1148_v15 = vunpack.c.l.bf16 %v1222_v6 }
 0x23d   :  { %942 = vmatpush.msrb.mxu1 %v1136_v30  ;;  %1005 = vmatpush.msrb.mxu3 %v1189_v19  ;;  %v1116_v30 = vunpack.c.l.bf16 %v1214_v27 }
 0x23e   :  { %972 = vmatpush.msrb.mxu2 %v1165_v31  ;;  %892 = vperm.xlu0 %1332, %v886_v62   ;;  %v1145_v31 = vunpack.c.h.bf16 %v1221_v54 }
 0x23f   :  { %943 = vmatpush.msrb.mxu1 %v1133_v14  ;;  %1006 = vmatpush.msrb.mxu3 %v1188_v61  ;;  %v1113_v14 = vunpack.c.h.bf16 %v1213_v56 }
 0x240   :  { %973 = vmatpush.msrb.mxu2 %v1164_v33  ;;  %v1144_v33 = vunpack.c.l.bf16 %v1221_v54 }
 0x241   :  { %944 = vmatpush.msrb.mxu1 %v1132_v38  ;;  %1007 = vmatpush.msrb.mxu3 %v1185_v7 }
 0x242   :  { %974 = vmatpush.msrb.mxu2 %v1161_v41  ;;  %902 = vperm.xlu2 %1334, %v888_v52  }
 0x243   :  { %945 = vmatpush.msrb.mxu1 %v1129_v42  ;;  %1008 = vmatpush.msrb.mxu3 %v1184_v10  ;;  %v887_v42 = vld [vmem:[%s1862_s2 + $0x8] sm:$0xff]  ;;  %s1399_s2 = smov [#allocation6]  }
 0x244   :  { %975 = vmatpush.msrb.mxu2 %v1160_v55  ;;  %897 = vperm.xlu1 %1333, %v887_v42   ;;  %s1042_s30 = sshll.u32 %s1399_s2, 4  ;;  %s1043_s30 = int_to_ptr.vmem [resolvable:$true] %s1042_s30 }
 0x245   :  { %946 = vmatpush.msrb.mxu1 %v1128_v21  ;;  %1009 = vmatpush.msrb.mxu3 %v1181_v29 }
 0x246   :  { %976 = vmatpush.msrb.mxu2 %v1157_v22 }
 0x247   :  { %947 = vmatpush.msrb.mxu1 %v1125_v59  ;;  %1010 = vmatpush.msrb.mxu3 %v1180_v16 }
 0x248   :  { %977 = vmatpush.msrb.mxu2 %v1156_v20 }
 0x249   :  { %948 = vmatpush.msrb.mxu1 %v1124_v60  ;;  %1011 = vmatpush.msrb.mxu3 %v1177_v32 }
 0x24a   :  { %978 = vmatpush.msrb.mxu2 %v1153_v4 }
 0x24b   :  { %949 = vmatpush.msrb.mxu1 %v1121_v25  ;;  %1012 = vmatpush.msrb.mxu3 %v1176_v35 }
 0x24c   :  { %979 = vmatpush.msrb.mxu2 %v1152_v8  ;;  %907 = vperm.xlu1 %1333, %v889_v47  }
 0x24d   :  { %950 = vmatpush.msrb.mxu1 %v1120_v28 }
 0x24e   :  { %980 = vmatpush.msrb.mxu2 %v1149_v11 }
 0x24f   :  { %951 = vmatpush.msrb.mxu1 %v1117_v24 }
 0x250   :  { %981 = vmatpush.msrb.mxu2 %v1148_v15 }
 0x251   :  { %952 = vmatpush.msrb.mxu1 %v1116_v30 }
 0x252   :  { %982 = vmatpush.msrb.mxu2 %v1145_v31 }
 0x253   :  { %953 = vmatpush.msrb.mxu1 %v1113_v14 }
 0x254   :  { %983 = vmatpush.msrb.mxu2 %v1144_v33 }
 0x255   :  { %954 = vmatpush.msrb.mxu1 %v1112_v34 }
 0x27b   :  { %v1299_v37 = vpop.permute.xlu2 %1298 }
 0x27c   :  { %v1301_v38 = vunpack.i.h.bf16 %v1299_v37  ;;  %v1300_v39 = vunpack.i.l.bf16 %v1299_v37 }
 0x27e   :  { %v734_v40 = vsel %vm218_vm3, %v1300_v39, %v1301_v38 }
 0x27f   :  { %v742_v41 = vmax.f32 %v1701_v50, %v734_v40 }
 0x281   :  { %926 = vmatmul.f32.vlgmr.msrb.gmra.mxu0 %v742_v41 }
 0x28b   :  { %v1314_v60 = vpop.permute.xlu2 %1313 }
 0x28c   :  { %v1316_v8 = vunpack.i.h.bf16 %v1314_v60  ;;  %v1315_v28 = vunpack.i.l.bf16 %v1314_v60 }
 0x293   :  { %v1294_v53 = vpop.permute.xlu1 %1293  ;;  %v1329_v24 = vpop.permute.xlu2 %1328 }
 0x294   :  { %v1296_v55 = vunpack.i.h.bf16 %v1294_v53  ;;  %v1295_v21 = vunpack.i.l.bf16 %v1294_v53  ;;  %v1331_v16 = vunpack.i.h.bf16 %v1329_v24  ;;  %v1330_v54 = vunpack.i.l.bf16 %v1329_v24 }
 0x296   :  { %v730_v50 = vsel %vm218_vm3, %v1301_v38, %v1295_v21  ;;  %v726_v57 = vsel %vm218_vm3, %v1295_v21, %v1296_v55  ;;  %v738_v58 = vsel %vm218_vm3, %v1296_v55, %v1300_v39  ;;  %v737_v32 = vsel %vm218_vm3, %v1330_v54, %v1331_v16 }
 0x297   :  { %v743_v22 = vmax.f32 %v1703_v51, %v730_v50  ;;  %v744_v59 = vmax.f32 %v1697_v48, %v726_v57  ;;  %v745_v19 = vmax.f32 %v1699_v49, %v738_v58 }
 0x299   :  { %955 = vmatmul.f32.vlgmr.msrb.gmra.mxu1 %v743_v22  ;;  %984 = vmatmul.f32.vlgmr.msrb.gmra.mxu2 %v744_v59 }
 0x29a   :  { %1013 = vmatmul.f32.vlgmr.msrb.gmra.mxu3 %v745_v19  ;;  %v1304_v20 = vpop.permute.xlu0 %1303 }
 0x29b   :  { %v1309_v61 = vpop.permute.xlu1 %1308  ;;  %v1306_v62 = vunpack.i.h.bf16 %v1304_v20  ;;  %v1305_v63 = vunpack.i.l.bf16 %v1304_v20 }
 0x29c   :  { %v1311_v5 = vunpack.i.h.bf16 %v1309_v61  ;;  %v1310_v4 = vunpack.i.l.bf16 %v1309_v61  ;;  %v903_v50 = vpop.permute.xlu2 %902 }
 0x29d   :  { %v727_v25 = vsel %vm218_vm3, %v1305_v63, %v1306_v62 }
 0x29e   :  { %v735_v51 = vsel %vm218_vm3, %v1310_v4, %v1311_v5  ;;  %v731_v48 = vsel %vm218_vm3, %v1311_v5, %v1305_v63  ;;  %v748_v49 = vmax.f32 %v1732_v18, %v727_v25  ;;  %v739_v26 = vsel %vm218_vm3, %v1306_v62, %v1310_v4 }
 0x29f   :  { %v746_v6 = vmax.f32 %v1726_v12, %v735_v51  ;;  %v747_v27 = vmax.f32 %v1729_v17, %v731_v48  ;;  %v749_v7 = vmax.f32 %v1735_v23, %v739_v26  ;;  %v728_v18 = vsel %vm218_vm3, %v1315_v28, %v1316_v8 }
 0x2a0   :  { %v752_v56 = vmax.f32 %v1758_v45, %v728_v18  ;;  %v754_v45 = vmax.f32 %v1784_v2, %v737_v32 }
 0x2a1   :  { %929 = vmatmul.f32.gmra.mxu0 %v746_v6  ;;  %958 = vmatmul.f32.gmra.mxu1 %v747_v27 }
 0x2a2   :  { %987 = vmatmul.f32.gmra.mxu2 %v748_v49  ;;  %1016 = vmatmul.f32.gmra.mxu3 %v749_v7 }
 0x2a3   :  { %v1319_v9 = vpop.permute.xlu0 %1318 }
 0x2a4   :  { %v1321_v10 = vunpack.i.h.bf16 %v1319_v9  ;;  %v1320_v11 = vunpack.i.l.bf16 %v1319_v9 }
 0x2a6   :  { %v736_v12 = vsel %vm218_vm3, %v1320_v11, %v1321_v10  ;;  %v732_v17 = vsel %vm218_vm3, %v1321_v10, %v1315_v28  ;;  %v740_v23 = vsel %vm218_vm3, %v1316_v8, %v1320_v11 }
 0x2a7   :  { %v750_v29 = vmax.f32 %v1752_v43, %v736_v12  ;;  %v751_v15 = vmax.f32 %v1755_v44, %v732_v17  ;;  %v753_v30 = vmax.f32 %v1761_v46, %v740_v23 }
 0x2a9   :  { %932 = vmatmul.f32.gmra.mxu0 %v750_v29  ;;  %961 = vmatmul.f32.gmra.mxu1 %v751_v15 }
 0x2aa   :  { %990 = vmatmul.f32.gmra.mxu2 %v752_v56  ;;  %1019 = vmatmul.f32.gmra.mxu3 %v753_v30 }
 0x2ab   :  { %v1324_v13 = vpop.permute.xlu1 %1323 }
 0x2ac   :  { %v1326_v31 = vunpack.i.h.bf16 %v1324_v13  ;;  %v1325_v14 = vunpack.i.l.bf16 %v1324_v13 }
 0x2ae   :  { %v733_v43 = vsel %vm218_vm3, %v1331_v16, %v1325_v14  ;;  %v729_v44 = vsel %vm218_vm3, %v1325_v14, %v1326_v31  ;;  %v741_v46 = vsel %vm218_vm3, %v1326_v31, %v1330_v54 }
 0x2af   :  { %v755_v33 = vmax.f32 %v1787_v3, %v733_v43  ;;  %v756_v34 = vmax.f32 %v1778_v0, %v729_v44  ;;  %v757_v35 = vmax.f32 %v1781_v1, %v741_v46 }
 0x2b0   :  { %v893_v37 = vpop.permute.xlu0 %892 }
 0x2b1   :  { %935 = vmatmul.f32.gmra.mxu0 %v754_v45  ;;  %964 = vmatmul.f32.gmra.mxu1 %v755_v33 }
 0x2b2   :  { %993 = vmatmul.f32.gmra.mxu2 %v756_v34  ;;  %1022 = vmatmul.f32.gmra.mxu3 %v757_v35 }
 0x2b6   :  { %v898_v52 = vpop.permute.xlu1 %897 }
 0x2be   :  { %v908_v48 = vpop.permute.xlu1 %907 }
 0x2fe   :  { %v927_v38 = vpop.f32.mrf.mxu0 }
 0x2ff   :  { %v928_v40 = vadd.f32 %v927_v38, %v893_v37 }
 0x316   :  { %v956_v39 = vpop.f32.mrf.mxu1 }
 0x317   :  { %v957_v41 = vadd.f32 %v956_v39, %v928_v40 }
 0x31c   :  { %v985_v42 = vpop.f32.mrf.mxu2 }
 0x31d   :  { %v986_v36 = vadd.f32 %v985_v42, %v957_v41  ;;  %v1014_v47 = vpop.f32.mrf.mxu3 }
 0x31e   :  { %v930_v2 = vpop.f32.mrf.mxu0  ;;  %v959_v3 = vpop.f32.mrf.mxu1 }
 0x31f   :  { %v1015_v53 = vadd.f32 %v1014_v47, %v986_v36  ;;  %v931_v55 = vadd.f32 %v930_v2, %v898_v52 }
 0x321   :  { %v1026_v0 = vmax.f32 %v1015_v53, 0.0  ;;  %v960_v1 = vadd.f32 %v959_v3, %v931_v55 }
 0x323   :  { %v1030_v21 = vmin.f32 %v1026_v0, 6.0 }
 0x325   :  { %1034 = vst [vmem:[#allocation6] sm:$0xff] %v1030_v21  ;;  %v988_v57 = vpop.f32.mrf.mxu2  ;;  %v1017_v58 = vpop.f32.mrf.mxu3 }
 0x326   :  { %v989_v22 = vadd.f32 %v988_v57, %v960_v1  ;;  %v933_v59 = vpop.f32.mrf.mxu0  ;;  %v962_v60 = vpop.f32.mrf.mxu1 }
 0x327   :  { %v934_v20 = vadd.f32 %v933_v59, %v903_v50 }
 0x328   :  { %v1018_v19 = vadd.f32 %v1017_v58, %v989_v22 }
 0x329   :  { %v963_v63 = vadd.f32 %v962_v60, %v934_v20 }
 0x32a   :  { %v1027_v61 = vmax.f32 %v1018_v19, 0.0 }
 0x32c   :  { %v1031_v62 = vmin.f32 %v1027_v61, 6.0 }
 0x32d   :  { %v991_v5 = vpop.f32.mrf.mxu2  ;;  %v1020_v4 = vpop.f32.mrf.mxu3 }
 0x32e   :  { %1035 = vst [vmem:[#allocation6 + $0x8] sm:$0xff] %v1031_v62  ;;  %v992_v25 = vadd.f32 %v991_v5, %v963_v63  ;;  %v936_v51 = vpop.f32.mrf.mxu0  ;;  %v965_v27 = vpop.f32.mrf.mxu1 }
 0x32f   :  { %v937_v26 = vadd.f32 %v936_v51, %v908_v48 }
 0x330   :  { %v1021_v49 = vadd.f32 %v1020_v4, %v992_v25 }
 0x331   :  { %v966_v8 = vadd.f32 %v965_v27, %v937_v26 }
 0x332   :  { %v1028_v6 = vmax.f32 %v1021_v49, 0.0 }
 0x334   :  { %v1032_v7 = vmin.f32 %v1028_v6, 6.0 }
 0x335   :  { %v994_v28 = vpop.f32.mrf.mxu2  ;;  %v1023_v10 = vpop.f32.mrf.mxu3 }
 0x336   :  { %1036 = vst [vmem:[#allocation6 + $0x10] sm:$0xff] %v1032_v7  ;;  %v995_v9 = vadd.f32 %v994_v28, %v966_v8 }
 0x338   :  { %v1024_v11 = vadd.f32 %v1023_v10, %v995_v9 }
 0x33a   :  { %v1029_v24 = vmax.f32 %v1024_v11, 0.0 }
 0x33c   :  { %v1033_v18 = vmin.f32 %v1029_v24, 6.0 }
 0x33e   :  { %1037 = vst [vmem:[#allocation6 + $0x18] sm:$0xff] %v1033_v18 }
 0x33f   :  { %1050 = dma.vmem_to_hbm [thread:$0]  %s1043_s30, 512, %s1045_s8, [#allocation5], %s1400_s0, %s1400_s0, %s1401_s9  }
 0x340   :  { %1385 = dma.done.wait [#allocation5], 512  }
 0x341   :  { %1386 = vsyncadd [#allocation5], 4294966784 }
 0x342   :  { %1055 = vsyncpa [#allocation4], 1 }
 0x343   :  { %1056 = vsyncpa [#allocation5], 1 }

</bundles_post_ra>
